<compile_context>
chip_gen: v5e
topology: v5e:2x2
jax: 0.10.0
libtpu: 0.0.40
codegen_flags: <defaults>
</compile_context>

<pallas_src>
import functools

import jax
import jax.numpy as jnp
from jax.experimental import pallas as pl
from jax.experimental.pallas import tpu as pltpu

BN_EPS = 1e-5
LANE = 128


def _round_up(x, m):
    return (x + m - 1) // m * m


@functools.lru_cache(maxsize=None)
def _vmem_limit_bytes():
    """Scoped-VMEM limit per generation.

    v5e/v6e have 128 MiB physical VMEM -> raise the scoped limit so larger tiles land.
    v7x has only 64 MiB physical (and unknown chips get the conservative default).
    """
    try:
        kind = jax.devices()[0].device_kind.lower()
    except Exception:
        kind = ""
    if ("v5" in kind) or ("v6" in kind):
        return 100 * 1024 * 1024
    return 48 * 1024 * 1024


def _pick_th(h_out, w_out, w_pad, c_in, c_pad, kh, dilation, k_all, budget):
    """Output rows per grid step.

    Largest TH such that (a) the matmul M dim TH*W_out stays <= 1024 (vreg pressure),
    (b) the double-buffered per-step footprint fits `budget`.  The grid uses cdiv, so
    TH does not need to divide H_out (padded rows are zero and masked out of stats).
    """
    for th in (32, 16, 8, 4, 2, 1):
        if th > h_out and th > 1:
            continue
        if th * w_out > 1024 and th > 1:
            continue
        th_in = th + (kh - 1) * dilation
        fp = (2 * th_in * w_pad * c_in * 2      # x halo tile, bf16, double buffered
              + 2 * th * w_out * c_pad * 2      # y tile, bf16, double buffered
              + 2 * 8 * c_pad * 4               # stats tile
              + 2 * k_all * c_pad * 2           # weight slab (worst case 2 buffers)
              + th * w_out * k_all * 2          # in-kernel patch operand (bf16)
              + th * w_out * c_pad * 4)         # f32 accumulator
        if fp <= budget:
            return th
    return 1


# --------------------------------------------------------------------------------------
# Kernel A: K-folded convolution (single bf16 MXU matmul per grid step, f32 accumulate)
#           + per-tile centered BatchNorm statistics.
# Grid: (N, nh), both axes 'parallel'.  Refs:
#   x_ref     -> halo tile    (1, 1, TH_in, W_pad, C_in)  bf16
#   w_ref     -> weight slab  (kh*kw*C_in, C_pad)         bf16 (resident)
#   y_ref     -> conv output  (1, TH, W_out, C_pad)       bf16
#   stats_ref -> statistics   (1, 1, 8, C_pad)            f32 (row0=sum, row1=centered SS)
# --------------------------------------------------------------------------------------
def _conv_stats_kernel(kh, kw, dilation, th, w_out, h_out,
                       x_ref, w_ref, y_ref, stats_ref):
    c_pad = y_ref.shape[-1]
    slab = x_ref[0, 0]                                     # (TH_in, W_pad, C_in) bf16

    # Build the (TH*W_out, kh*kw*C_in) patch operand in VMEM: K-fold every tap into
    # the contraction dim, then one MXU matmul against the resident weight slab.
    wins = []
    for i in range(kh):
        for j in range(kw):
            r0 = i * dilation
            c0 = j * dilation
            wins.append(slab[r0:r0 + th, c0:c0 + w_out, :])    # (TH, W_out, C_in)
    patches = jnp.concatenate(wins, axis=-1)                   # (TH, W_out, kh*kw*C_in)
    patches = patches.reshape(th * w_out, -1)
    acc = jnp.dot(patches, w_ref[...],
                  preferred_element_type=jnp.float32)          # (TH*W_out, C_pad) f32

    # bf16 intermediate (stats are taken from the f32 accumulator below).
    y_ref[0] = acc.reshape(th, w_out, c_pad).astype(y_ref.dtype)

    # Per-tile centered BN statistics.  Rows past H_out (H-tiling pad) are exactly zero
    # (zero-padded input, no conv bias) so they do not perturb the sum; they are masked
    # out of the centered sum-of-squares and excluded from the count.
    ht = pl.program_id(1)
    valid_rows = jnp.minimum(h_out - ht * th, th)              # >= 1
    cnt = (valid_rows * w_out).astype(jnp.float32)
    rid = jax.lax.broadcasted_iota(jnp.int32, (th * w_out, 1), 0)
    vmask = rid < valid_rows * w_out

    tsum = jnp.sum(acc, axis=0, keepdims=True)                 # (1, C_pad)
    tmean = tsum / cnt
    diff = jnp.where(vmask, acc - tmean, 0.0)
    tss = jnp.sum(diff * diff, axis=0, keepdims=True)          # (1, C_pad)

    srow = jax.lax.broadcasted_iota(jnp.int32, (8, c_pad), 0)  # 8-sublane stats block
    stats_ref[0, 0] = jnp.where(srow == 0, tsum, jnp.where(srow == 1, tss, 0.0))


# --------------------------------------------------------------------------------------
# Kernel B: y * scale + shift fused with ReLU over lane-dense (tm, C_pad) blocks.
# scale = gamma * rsqrt(var + eps), shift = beta - mean * scale (precomputed, f32).
# --------------------------------------------------------------------------------------
def _bn_relu_kernel(y_ref, scale_ref, shift_ref, o_ref):
    y = y_ref[...].astype(jnp.float32)
    o_ref[...] = jnp.maximum(y * scale_ref[...] + shift_ref[...], 0.0).astype(o_ref.dtype)


@functools.partial(jax.jit, static_argnames=("padding", "dilation", "out_dtype"))
def conv_block_forward_nhwc(x_nhwc, weight, gamma, beta, *, padding, dilation,
                            out_dtype=jnp.float32):
    """ConvBlock.forward on NHWC activations.

    x_nhwc: (N, H, W, C_in) f32; weight: (C_out, C_in, kh, kw) f32 (PyTorch OIHW);
    gamma/beta: (C_out,) f32.  Conv bias is intentionally omitted: it cancels exactly
    under training-mode BatchNorm.
    """
    N, H, W, C_in = x_nhwc.shape
    C_out, C_in_w, kh, kw = weight.shape
    assert C_in == C_in_w

    H_out = H + 2 * padding - dilation * (kh - 1)
    W_out = W + 2 * padding - dilation * (kw - 1)
    W_pad = W + 2 * padding
    C_pad = _round_up(C_out, LANE)                 # lane-dense output channels
    K_all = kh * kw * C_in                         # folded contraction dim

    vmem_limit = _vmem_limit_bytes()
    TH = _pick_th(H_out, W_out, W_pad, C_in, C_pad, kh, dilation, K_all,
                  budget=vmem_limit // 2)
    nh = pl.cdiv(H_out, TH)
    H_out_p = nh * TH
    TH_in = TH + (kh - 1) * dilation

    # ---- layout prep (one fused pad+cast+halo-tiling pass; in a full UNet this would
    # ---- be fused into the previous layer's epilogue) --------------------------------
    H_need = H_out_p + (kh - 1) * dilation         # padded rows the tiles read
    pad_bottom = H_need - H - padding              # >= padding by construction
    x_p = jnp.pad(
        x_nhwc, ((0, 0), (padding, pad_bottom), (padding, padding), (0, 0))
    ).astype(jnp.bfloat16)
    # (N, nh, TH_in, W_pad, C_in): non-overlapping H tiles + (kh-1)*dilation halo rows.
    x_tiles = jnp.stack(
        [x_p[:, t * TH: t * TH + TH_in] for t in range(nh)], axis=1)

    # (C_out, C_in, kh, kw) -> (kh, kw, C_in, C_out) -> (kh*kw*C_in, C_pad), bf16.
    w_slab = jnp.transpose(weight, (2, 3, 1, 0)).reshape(K_all, C_out)
    w_slab = jnp.pad(w_slab, ((0, 0), (0, C_pad - C_out))).astype(jnp.bfloat16)

    # ---- kernel A: K-folded conv + per-tile centered stats ---------------------------
    y, stats = pl.pallas_call(
        functools.partial(_conv_stats_kernel, kh, kw, dilation, TH, W_out, H_out),
        out_shape=(
            jax.ShapeDtypeStruct((N, H_out_p, W_out, C_pad), jnp.bfloat16),
            jax.ShapeDtypeStruct((N, nh, 8, C_pad), jnp.float32),
        ),
        grid=(N, nh),
        in_specs=[
            pl.BlockSpec((1, 1, TH_in, W_pad, C_in), lambda n, t: (n, t, 0, 0, 0)),
            pl.BlockSpec((K_all, C_pad), lambda n, t: (0, 0)),      # resident weights
        ],
        out_specs=(
            pl.BlockSpec((1, TH, W_out, C_pad), lambda n, t: (n, t, 0, 0)),
            pl.BlockSpec((1, 1, 8, C_pad), lambda n, t: (n, t, 0, 0)),
        ),
        compiler_params=pltpu.CompilerParams(
            dimension_semantics=("parallel", "parallel"),
            vmem_limit_bytes=vmem_limit,
        ),
    )(x_tiles, w_slab)

    # ---- finalize BN statistics: exact combine of per-tile centered stats ------------
    M = N * H_out * W_out
    counts = (jnp.minimum(H_out - jnp.arange(nh) * TH, TH) * W_out).astype(jnp.float32)
    tile_sum = stats[:, :, 0, :]                                    # (N, nh, C_pad)
    tile_ss = stats[:, :, 1, :]
    mean = jnp.sum(tile_sum, axis=(0, 1)) / M
    tile_mean = tile_sum / counts[None, :, None]
    between = counts[None, :, None] * jnp.square(tile_mean - mean[None, None, :])
    var = jnp.maximum(
        (jnp.sum(tile_ss, axis=(0, 1)) + jnp.sum(between, axis=(0, 1))) / M, 0.0)

    gamma_p = jnp.pad(gamma.astype(jnp.float32), (0, C_pad - C_out))
    beta_p = jnp.pad(beta.astype(jnp.float32), (0, C_pad - C_out))
    scale = gamma_p * jax.lax.rsqrt(var + BN_EPS)
    shift = beta_p - mean * scale

    # ---- kernel B: fused scale/shift + ReLU over lane-dense row tiles ----------------
    M_p = N * H_out_p * W_out
    y_flat = y.reshape(M_p, C_pad)                 # contiguous reshape, no data movement
    tm = M_p if M_p <= 512 else 512                # cdiv grid -> divisibility-proof
    out_flat = pl.pallas_call(
        _bn_relu_kernel,
        out_shape=jax.ShapeDtypeStruct((M_p, C_pad), out_dtype),
        grid=(pl.cdiv(M_p, tm),),
        in_specs=[
            pl.BlockSpec((tm, C_pad), lambda m: (m, 0)),
            pl.BlockSpec((1, C_pad), lambda m: (0, 0)),
            pl.BlockSpec((1, C_pad), lambda m: (0, 0)),
        ],
        out_specs=pl.BlockSpec((tm, C_pad), lambda m: (m, 0)),
        compiler_params=pltpu.CompilerParams(
            dimension_semantics=("parallel",),
            vmem_limit_bytes=vmem_limit,
        ),
    )(y_flat, scale.reshape(1, C_pad), shift.reshape(1, C_pad))

    # TODO(synk): a full UNet would keep the lane-padded C dim (and NHWC layout)
    # end-to-end so this slice copy disappears for C_out % 128 != 0 layers.
    return out_flat.reshape(N, H_out_p, W_out, C_pad)[:, :H_out, :, :C_out]


def conv_block_forward(x_nchw, weight, bias, gamma, beta, *, padding, dilation):
    """PyTorch-layout (NCHW) boundary wrapper around the NHWC core.

    `bias` is accepted for drop-in parity but intentionally unused: a per-channel
    constant added before training-mode BatchNorm cancels exactly in the mean
    subtraction.
    """
    del bias
    x_nhwc = jnp.transpose(x_nchw, (0, 2, 3, 1))
    out_nhwc = conv_block_forward_nhwc(x_nhwc, weight, gamma, beta,
                                       padding=padding, dilation=dilation)
    return jnp.transpose(out_nhwc, (0, 3, 1, 2))


def _reference_forward(x_nchw, weight, bias, gamma, beta, *, padding, dilation):
    """Pure-JAX f32 reference (lax conv + batchnorm + relu) for a correctness check."""
    y = jax.lax.conv_general_dilated(
        x_nchw, weight,
        window_strides=(1, 1),
        padding=[(padding, padding), (padding, padding)],
        rhs_dilation=(dilation, dilation),
        dimension_numbers=("NCHW", "OIHW", "NCHW"),
    ) + bias.reshape(1, -1, 1, 1)
    mean = jnp.mean(y, axis=(0, 2, 3), keepdims=True)
    var = jnp.mean(jnp.square(y - mean), axis=(0, 2, 3), keepdims=True)
    y_hat = (y - mean) * jax.lax.rsqrt(var + BN_EPS)
    y_bn = y_hat * gamma.reshape(1, -1, 1, 1) + beta.reshape(1, -1, 1, 1)
    return jnp.maximum(y_bn, 0.0)


if __name__ == "__main__":
    # ConvBlock(num_filters=4, kernel_size=3, padding=1, dilation=1)
    num_filters = 4
    kernel_size = 3
    padding = 1
    dilation = 1

    N, C, H, W = 2, num_filters, 16, 16

    key = jax.random.PRNGKey(0)
    kx, kw_, kb = jax.random.split(key, 3)

    x = jax.random.normal(kx, (N, C, H, W), dtype=jnp.float32)

    # Deterministic parameter init (Conv2d-like uniform fan-in scaling).
    fan_in = C * kernel_size * kernel_size
    bound = 1.0 / jnp.sqrt(jnp.float32(fan_in))
    weight = jax.random.uniform(
        kw_, (num_filters, C, kernel_size, kernel_size),
        minval=-bound, maxval=bound, dtype=jnp.float32)
    bias = jax.random.uniform(
        kb, (num_filters,), minval=-bound, maxval=bound, dtype=jnp.float32)
    # BatchNorm2d default affine init.
    gamma = jnp.ones((num_filters,), dtype=jnp.float32)
    beta = jnp.zeros((num_filters,), dtype=jnp.float32)

    out = conv_block_forward(x, weight, bias, gamma, beta,
                             padding=padding, dilation=dilation)
    out = jax.block_until_ready(out)

    ref = _reference_forward(x, weight, bias, gamma, beta,
                             padding=padding, dilation=dilation)
    assert out.shape == (N, num_filters, H, W)
    # bf16 MXU operands + bf16 conv intermediate vs. a pure-f32 reference.
    assert jnp.allclose(out, ref, atol=2e-2, rtol=2e-2), "mismatch vs reference"

    print("KERNEL_OK")
</pallas_src>

<mosaic_0001>
module attributes {stable_mosaic.version = 11 : i64} {
  func.func @_conv_stats_kernel(%arg0: i32, %arg1: i32, %arg2: memref<1x1x18x18x4xbf16, #tpu.memory_space<vmem>>, %arg3: memref<36x128xbf16, #tpu.memory_space<vmem>>, %arg4: memref<1x16x16x128xbf16, #tpu.memory_space<vmem>>, %arg5: memref<1x1x8x128xf32, #tpu.memory_space<vmem>>) attributes {dimension_semantics = [#tpu.dimension_semantics<parallel>, #tpu.dimension_semantics<parallel>], iteration_bounds = array<i64: 2, 1>, scalar_prefetch = 0 : i64, scratch_operands = 0 : i64, tpu.core_type = #tpu.core_type<tc>, window_params = [{transform_indices = @transform_0, window_bounds = array<i64: 1, 1, 18, 18, 4>}, {pipeline_mode = #tpu.pipeline_mode<synchronous>, transform_indices = @transform_1, window_bounds = array<i64: 36, 128>}, {transform_indices = @transform_2, window_bounds = array<i64: 1, 16, 16, 128>}, {transform_indices = @transform_3, window_bounds = array<i64: 1, 1, 8, 128>}]} {
    %c0 = arith.constant 0 : index
    %c0_0 = arith.constant 0 : index
    %c0_1 = arith.constant 0 : index
    %c0_2 = arith.constant 0 : index
    %c0_3 = arith.constant 0 : index
    %0 = vector.load %arg2[%c0, %c0_0, %c0_1, %c0_2, %c0_3] : memref<1x1x18x18x4xbf16, #tpu.memory_space<vmem>>, vector<1x1x18x18x4xbf16>
    %1 = vector.shape_cast %0 : vector<1x1x18x18x4xbf16> to vector<18x18x4xbf16>
    %2 = vector.extract_strided_slice %1 {offsets = [0, 0, 0], sizes = [16, 16, 4], strides = [1, 1, 1]} : vector<18x18x4xbf16> to vector<16x16x4xbf16>
    %3 = vector.extract_strided_slice %1 {offsets = [0, 1, 0], sizes = [16, 16, 4], strides = [1, 1, 1]} : vector<18x18x4xbf16> to vector<16x16x4xbf16>
    %4 = vector.extract_strided_slice %1 {offsets = [0, 2, 0], sizes = [16, 16, 4], strides = [1, 1, 1]} : vector<18x18x4xbf16> to vector<16x16x4xbf16>
    %5 = vector.extract_strided_slice %1 {offsets = [1, 0, 0], sizes = [16, 16, 4], strides = [1, 1, 1]} : vector<18x18x4xbf16> to vector<16x16x4xbf16>
    %6 = vector.extract_strided_slice %1 {offsets = [1, 1, 0], sizes = [16, 16, 4], strides = [1, 1, 1]} : vector<18x18x4xbf16> to vector<16x16x4xbf16>
    %7 = vector.extract_strided_slice %1 {offsets = [1, 2, 0], sizes = [16, 16, 4], strides = [1, 1, 1]} : vector<18x18x4xbf16> to vector<16x16x4xbf16>
    %8 = vector.extract_strided_slice %1 {offsets = [2, 0, 0], sizes = [16, 16, 4], strides = [1, 1, 1]} : vector<18x18x4xbf16> to vector<16x16x4xbf16>
    %9 = vector.extract_strided_slice %1 {offsets = [2, 1, 0], sizes = [16, 16, 4], strides = [1, 1, 1]} : vector<18x18x4xbf16> to vector<16x16x4xbf16>
    %10 = vector.extract_strided_slice %1 {offsets = [2, 2, 0], sizes = [16, 16, 4], strides = [1, 1, 1]} : vector<18x18x4xbf16> to vector<16x16x4xbf16>
    %11 = tpu.concatenate %2, %3, %4, %5, %6, %7, %8, %9, %10 in 2 : vector<16x16x4xbf16>, vector<16x16x4xbf16>, vector<16x16x4xbf16>, vector<16x16x4xbf16>, vector<16x16x4xbf16>, vector<16x16x4xbf16>, vector<16x16x4xbf16>, vector<16x16x4xbf16>, vector<16x16x4xbf16> -> vector<16x16x36xbf16>
    %12 = vector.shape_cast %11 : vector<16x16x36xbf16> to vector<256x36xbf16>
    %c0_4 = arith.constant 0 : index
    %c0_5 = arith.constant 0 : index
    %13 = vector.load %arg3[%c0_4, %c0_5] : memref<36x128xbf16, #tpu.memory_space<vmem>>, vector<36x128xbf16>
    %cst = arith.constant dense<0.000000e+00> : vector<256x128xf32>
    %14 = tpu.matmul %12, %13, %cst {dimension_numbers = #tpu.dot_dimension_numbers<[1], [0], [0], [1], [0, 0, 1, 1], [], []>} : vector<256x36xbf16>, vector<36x128xbf16>, vector<256x128xf32> -> vector<256x128xf32>
    %15 = vector.shape_cast %14 : vector<256x128xf32> to vector<16x16x128xf32>
    %16 = arith.truncf %15 : vector<16x16x128xf32> to vector<16x16x128xbf16>
    %c0_6 = arith.constant 0 : index
    %c0_7 = arith.constant 0 : index
    %c0_8 = arith.constant 0 : index
    %c0_9 = arith.constant 0 : index
    %17 = vector.load %arg4[%c0_6, %c0_7, %c0_8, %c0_9] : memref<1x16x16x128xbf16, #tpu.memory_space<vmem>>, vector<1x16x16x128xbf16>
    %18 = vector.shape_cast %17 : vector<1x16x16x128xbf16> to vector<16x16x128xbf16>
    %19 = vector.shape_cast %16 : vector<16x16x128xbf16> to vector<1x16x16x128xbf16>
    tpu.vector_store %arg4[%c0_6, %c0_7, %c0_8, %c0_9], %19 {strides = array<i32>} : memref<1x16x16x128xbf16, #tpu.memory_space<vmem>>, vector<1x16x16x128xbf16>,
    %c16_i32 = arith.constant 16 : i32
    %20 = arith.muli %arg1, %c16_i32 : i32
    %c16_i32_10 = arith.constant 16 : i32
    %21 = arith.subi %c16_i32_10, %20 : i32
    %c16_i32_11 = arith.constant 16 : i32
    %22 = arith.minsi %21, %c16_i32_11 : i32
    %c16_i32_12 = arith.constant 16 : i32
    %23 = arith.muli %22, %c16_i32_12 : i32
    %24 = arith.sitofp %23 : i32 to f32
    %25 = tpu.iota {dimensions = array<i32: 0>} : vector<256x1xi32>
    %c16_i32_13 = arith.constant 16 : i32
    %26 = arith.muli %22, %c16_i32_13 : i32
    %27 = vector.broadcast %26 : i32 to vector<256x1xi32>
    %28 = arith.cmpi slt, %25, %27 : vector<256x1xi32>
    %cst_14 = arith.constant dense<0.000000e+00> : vector<128xf32>
    %29 = vector.multi_reduction <add>, %14, %cst_14 [0] : vector<256x128xf32> to vector<128xf32>
    %30 = vector.shape_cast %29 : vector<128xf32> to vector<1x128xf32>
    %31 = vector.broadcast %24 : f32 to vector<1x128xf32>
    %32 = arith.divf %30, %31 : vector<1x128xf32>
    %33 = vector.broadcast %32 : vector<1x128xf32> to vector<256x128xf32>
    %34 = arith.subf %14, %33 : vector<256x128xf32>
    %cst_15 = arith.constant 0.000000e+00 : f32
    %35 = vector.shape_cast %28 : vector<256x1xi1> to vector<256x1xi1>
    %36 = vector.broadcast %35 : vector<256x1xi1> to vector<256x128xi1>
    %37 = vector.broadcast %cst_15 : f32 to vector<256x128xf32>
    %38 = arith.select %36, %34, %37 : vector<256x128xi1>, vector<256x128xf32>
    %39 = arith.mulf %38, %38 : vector<256x128xf32>
    %cst_16 = arith.constant dense<0.000000e+00> : vector<128xf32>
    %40 = vector.multi_reduction <add>, %39, %cst_16 [0] : vector<256x128xf32> to vector<128xf32>
    %41 = vector.shape_cast %40 : vector<128xf32> to vector<1x128xf32>
    %42 = tpu.iota {dimensions = array<i32: 0>} : vector<8x128xi32>
    %c0_i32 = arith.constant 0 : i32
    %43 = vector.broadcast %c0_i32 : i32 to vector<8x128xi32>
    %44 = arith.cmpi eq, %42, %43 : vector<8x128xi32>
    %c1_i32 = arith.constant 1 : i32
    %45 = vector.broadcast %c1_i32 : i32 to vector<8x128xi32>
    %46 = arith.cmpi eq, %42, %45 : vector<8x128xi32>
    %cst_17 = arith.constant 0.000000e+00 : f32
    %47 = vector.shape_cast %41 : vector<1x128xf32> to vector<1x128xf32>
    %48 = vector.broadcast %47 : vector<1x128xf32> to vector<8x128xf32>
    %49 = vector.broadcast %cst_17 : f32 to vector<8x128xf32>
    %50 = arith.select %46, %48, %49 : vector<8x128xi1>, vector<8x128xf32>
    %51 = vector.shape_cast %30 : vector<1x128xf32> to vector<1x128xf32>
    %52 = vector.broadcast %51 : vector<1x128xf32> to vector<8x128xf32>
    %53 = arith.select %44, %52, %50 : vector<8x128xi1>, vector<8x128xf32>
    %c0_18 = arith.constant 0 : index
    %c0_19 = arith.constant 0 : index
    %c0_20 = arith.constant 0 : index
    %c0_21 = arith.constant 0 : index
    %54 = vector.load %arg5[%c0_18, %c0_19, %c0_20, %c0_21] : memref<1x1x8x128xf32, #tpu.memory_space<vmem>>, vector<1x1x8x128xf32>
    %55 = vector.shape_cast %54 : vector<1x1x8x128xf32> to vector<8x128xf32>
    %56 = vector.shape_cast %53 : vector<8x128xf32> to vector<1x1x8x128xf32>
    tpu.vector_store %arg5[%c0_18, %c0_19, %c0_20, %c0_21], %56 {strides = array<i32>} : memref<1x1x8x128xf32, #tpu.memory_space<vmem>>, vector<1x1x8x128xf32>,
    return
  }
  func.func @transform_0(%arg0: i32, %arg1: i32) -> (i32, i32, i32, i32, i32) {
    %c0_i32 = arith.constant 0 : i32
    %c0_i32_0 = arith.constant 0 : i32
    %c0_i32_1 = arith.constant 0 : i32
    %c0_i32_2 = arith.constant 0 : i32
    return %arg0, %arg1, %c0_i32, %c0_i32_0, %c0_i32_1 : i32, i32, i32, i32, i32
  }
  func.func @transform_1(%arg0: i32, %arg1: i32) -> (i32, i32) {
    %c0_i32 = arith.constant 0 : i32
    %c0_i32_0 = arith.constant 0 : i32
    %c0_i32_1 = arith.constant 0 : i32
    return %c0_i32, %c0_i32_0 : i32, i32
  }
  func.func @transform_2(%arg0: i32, %arg1: i32) -> (i32, i32, i32, i32) {
    %c0_i32 = arith.constant 0 : i32
    %c0_i32_0 = arith.constant 0 : i32
    %c0_i32_1 = arith.constant 0 : i32
    return %arg0, %arg1, %c0_i32, %c0_i32_0 : i32, i32, i32, i32
  }
  func.func @transform_3(%arg0: i32, %arg1: i32) -> (i32, i32, i32, i32) {
    %c0_i32 = arith.constant 0 : i32
    %c0_i32_0 = arith.constant 0 : i32
    %c0_i32_1 = arith.constant 0 : i32
    return %arg0, %arg1, %c0_i32, %c0_i32_0 : i32, i32, i32, i32
  }
}

module attributes {stable_mosaic.version = 11 : i64} {
  func.func @_bn_relu_kernel(%arg0: i32, %arg1: memref<512x128xbf16, #tpu.memory_space<vmem>>, %arg2: memref<1x128xf32, #tpu.memory_space<vmem>>, %arg3: memref<1x128xf32, #tpu.memory_space<vmem>>, %arg4: memref<512x128xf32, #tpu.memory_space<vmem>>) attributes {dimension_semantics = [#tpu.dimension_semantics<parallel>], iteration_bounds = array<i64: 1>, scalar_prefetch = 0 : i64, scratch_operands = 0 : i64, tpu.core_type = #tpu.core_type<tc>, window_params = [{transform_indices = @transform_0, window_bounds = array<i64: 512, 128>}, {pipeline_mode = #tpu.pipeline_mode<synchronous>, transform_indices = @transform_1, window_bounds = array<i64: 1, 128>}, {pipeline_mode = #tpu.pipeline_mode<synchronous>, transform_indices = @transform_2, window_bounds = array<i64: 1, 128>}, {transform_indices = @transform_3, window_bounds = array<i64: 512, 128>}]} {
    %c0 = arith.constant 0 : index
    %c0_0 = arith.constant 0 : index
    %0 = vector.load %arg1[%c0, %c0_0] : memref<512x128xbf16, #tpu.memory_space<vmem>>, vector<512x128xbf16>
    %1 = arith.extf %0 : vector<512x128xbf16> to vector<512x128xf32>
    %c0_1 = arith.constant 0 : index
    %c0_2 = arith.constant 0 : index
    %2 = vector.load %arg2[%c0_1, %c0_2] : memref<1x128xf32, #tpu.memory_space<vmem>>, vector<1x128xf32>
    %3 = vector.broadcast %2 : vector<1x128xf32> to vector<512x128xf32>
    %4 = arith.mulf %1, %3 : vector<512x128xf32>
    %c0_3 = arith.constant 0 : index
    %c0_4 = arith.constant 0 : index
    %5 = vector.load %arg3[%c0_3, %c0_4] : memref<1x128xf32, #tpu.memory_space<vmem>>, vector<1x128xf32>
    %6 = vector.broadcast %5 : vector<1x128xf32> to vector<512x128xf32>
    %7 = arith.addf %4, %6 : vector<512x128xf32>
    %cst = arith.constant 0.000000e+00 : f32
    %8 = vector.broadcast %cst : f32 to vector<512x128xf32>
    %9 = arith.maximumf %7, %8 : vector<512x128xf32>
    %c0_5 = arith.constant 0 : index
    %c0_6 = arith.constant 0 : index
    %10 = vector.load %arg4[%c0_5, %c0_6] : memref<512x128xf32, #tpu.memory_space<vmem>>, vector<512x128xf32>
    tpu.vector_store %arg4[%c0_5, %c0_6], %9 {strides = array<i32>} : memref<512x128xf32, #tpu.memory_space<vmem>>, vector<512x128xf32>,
    return
  }
  func.func @transform_0(%arg0: i32) -> (i32, i32) {
    %c0_i32 = arith.constant 0 : i32
    %c0_i32_0 = arith.constant 0 : i32
    return %arg0, %c0_i32 : i32, i32
  }
  func.func @transform_1(%arg0: i32) -> (i32, i32) {
    %c0_i32 = arith.constant 0 : i32
    %c0_i32_0 = arith.constant 0 : i32
    %c0_i32_1 = arith.constant 0 : i32
    return %c0_i32, %c0_i32_0 : i32, i32
  }
  func.func @transform_2(%arg0: i32) -> (i32, i32) {
    %c0_i32 = arith.constant 0 : i32
    %c0_i32_0 = arith.constant 0 : i32
    %c0_i32_1 = arith.constant 0 : i32
    return %c0_i32, %c0_i32_0 : i32, i32
  }
  func.func @transform_3(%arg0: i32) -> (i32, i32) {
    %c0_i32 = arith.constant 0 : i32
    %c0_i32_0 = arith.constant 0 : i32
    return %arg0, %c0_i32 : i32, i32
  }
}

</mosaic_0001>

<bundles_post_ra>
// kernel: conv_block_forward_nhwc.3
= control target key start
LH: loop header
LB: loop body
LE: loop exit
PB: predicated region body
PF: predicated region fallthrough
CT: control target
= control target key end

     0   :  { %s1017_s0 = inlined_call_operand.vmem [shape: bf16[512,128], index: 0, kind: input, shape index: {}]   ;;  %s1018_s1 = inlined_call_operand.vmem [shape: f32[1,128], index: 1, kind: input, shape index: {}]   ;;  %s1019_s2 = inlined_call_operand.vmem [shape: f32[1,128], index: 2, kind: input, shape index: {}]   ;;  %s1020_s3 = inlined_call_operand.vmem [shape: f32[512,128], index: 3, kind: output, shape index: {}]  }
   0x1   :  { %v411_v0 = vld [vmem:[%s1017_s0] sm:$0xff]   ;;  %v538_v5 = vld [vmem:[%s1017_s0 + $0x8] sm:$0xff]   ;;  %v539_v8 = vld [vmem:[%s1017_s0 + $0x10] sm:$0xff]  }
   0x2   :  { %v597_v1 = vld [vmem:[%s1018_s1] ss:$0 sm:$0xff]  ;;  %v412_v2 = vunpack.c.l.bf16 %v411_v0  ;;  %v413_v4 = vunpack.c.h.bf16 %v411_v0  ;;  %v416_v6 = vunpack.c.l.bf16 %v538_v5  ;;  %v417_v7 = vunpack.c.h.bf16 %v538_v5  ;;  %v540_v9 = vld [vmem:[%s1017_s0 + $0x18] sm:$0xff]   ;;  %v542_v31 = vld [vmem:[%s1017_s0 + $0x28] sm:$0xff]  }
   0x3   :  { %v602_v3 = vld [vmem:[%s1019_s2] ss:$0 sm:$0xff]  ;;  %v420_v12 = vunpack.c.l.bf16 %v539_v8  ;;  %v421_v13 = vunpack.c.h.bf16 %v539_v8  ;;  %v424_v16 = vunpack.c.l.bf16 %v540_v9  ;;  %v425_v17 = vunpack.c.h.bf16 %v540_v9  ;;  %v543_v36 = vld [vmem:[%s1017_s0 + $0x30] sm:$0xff]   ;;  %v544_v41 = vld [vmem:[%s1017_s0 + $0x38] sm:$0xff]  }
   0x4   :  { %v146_v10 = vmul.f32 %v597_v1, %v412_v2  ;;  %v147_v11 = vmul.f32 %v597_v1, %v413_v4  ;;  %v148_v14 = vmul.f32 %v597_v1, %v416_v6  ;;  %v149_v15 = vmul.f32 %v597_v1, %v417_v7  ;;  %v541_v26 = vld [vmem:[%s1017_s0 + $0x20] sm:$0xff]   ;;  %v546_v5 = vld [vmem:[%s1017_s0 + $0x48] sm:$0xff]  }
   0x5   :  { %v150_v20 = vmul.f32 %v597_v1, %v420_v12  ;;  %v151_v21 = vmul.f32 %v597_v1, %v421_v13  ;;  %v152_v24 = vmul.f32 %v597_v1, %v424_v16  ;;  %v153_v25 = vmul.f32 %v597_v1, %v425_v17  ;;  %v545_v62 = vld [vmem:[%s1017_s0 + $0x40] sm:$0xff]  }
   0x6   :  { %v214_v18 = vadd.f32 %v602_v3, %v146_v10  ;;  %v215_v19 = vadd.f32 %v602_v3, %v147_v11  ;;  %v216_v22 = vadd.f32 %v602_v3, %v148_v14  ;;  %v217_v23 = vadd.f32 %v602_v3, %v149_v15  ;;  %v547_v10 = vld [vmem:[%s1017_s0 + $0x50] sm:$0xff]   ;;  %v548_v15 = vld [vmem:[%s1017_s0 + $0x58] sm:$0xff]  }
   0x7   :  { %v218_v29 = vadd.f32 %v602_v3, %v150_v20  ;;  %v219_v30 = vadd.f32 %v602_v3, %v151_v21  ;;  %v220_v34 = vadd.f32 %v602_v3, %v152_v24  ;;  %v221_v35 = vadd.f32 %v602_v3, %v153_v25 }
   0x8   :  { %v278_v27 = vmax.f32 %v214_v18, 0.0  ;;  %v279_v28 = vmax.f32 %v215_v19, 0.0  ;;  %v280_v32 = vmax.f32 %v216_v22, 0.0  ;;  %v281_v33 = vmax.f32 %v217_v23, 0.0 }
   0x9   :  { %v282_v37 = vmax.f32 %v218_v29, 0.0  ;;  %v283_v38 = vmax.f32 %v219_v30, 0.0  ;;  %v428_v39 = vunpack.c.l.bf16 %v541_v26  ;;  %v429_v40 = vunpack.c.h.bf16 %v541_v26 }
   0xa   :  { %342 = vst [vmem:[%s1020_s3] sm:$0xff] %v278_v27  ;;  %v284_v42 = vmax.f32 %v220_v34, 0.0  ;;  %v285_v43 = vmax.f32 %v221_v35, 0.0  ;;  %v432_v44 = vunpack.c.l.bf16 %v542_v31  ;;  %v433_v45 = vunpack.c.h.bf16 %v542_v31 }
   0xb   :  { %343 = vst [vmem:[%s1020_s3 + $0x8] sm:$0xff] %v279_v28  ;;  %v154_v46 = vmul.f32 %v597_v1, %v428_v39  ;;  %v155_v47 = vmul.f32 %v597_v1, %v429_v40  ;;  %v436_v48 = vunpack.c.l.bf16 %v543_v36  ;;  %v437_v49 = vunpack.c.h.bf16 %v543_v36  ;;  %v549_v36 = vld [vmem:[%s1017_s0 + $0x60] sm:$0xff]  }
   0xc   :  { %344 = vst [vmem:[%s1020_s3 + $0x10] sm:$0xff] %v280_v32  ;;  %v156_v50 = vmul.f32 %v597_v1, %v432_v44  ;;  %v157_v51 = vmul.f32 %v597_v1, %v433_v45  ;;  %v440_v52 = vunpack.c.l.bf16 %v544_v41  ;;  %v441_v53 = vunpack.c.h.bf16 %v544_v41  ;;  %v550_v41 = vld [vmem:[%s1017_s0 + $0x68] sm:$0xff]  }
   0xd   :  { %345 = vst [vmem:[%s1020_s3 + $0x18] sm:$0xff] %v281_v33  ;;  %v222_v54 = vadd.f32 %v602_v3, %v154_v46  ;;  %v223_v55 = vadd.f32 %v602_v3, %v155_v47  ;;  %v158_v56 = vmul.f32 %v597_v1, %v436_v48  ;;  %v159_v57 = vmul.f32 %v597_v1, %v437_v49  ;;  %v551_v46 = vld [vmem:[%s1017_s0 + $0x70] sm:$0xff]  }
   0xe   :  { %346 = vst [vmem:[%s1020_s3 + $0x20] sm:$0xff] %v282_v37  ;;  %v224_v58 = vadd.f32 %v602_v3, %v156_v50  ;;  %v225_v59 = vadd.f32 %v602_v3, %v157_v51  ;;  %v160_v60 = vmul.f32 %v597_v1, %v440_v52  ;;  %v161_v61 = vmul.f32 %v597_v1, %v441_v53  ;;  %v552_v51 = vld [vmem:[%s1017_s0 + $0x78] sm:$0xff]  }
   0xf   :  { %347 = vst [vmem:[%s1020_s3 + $0x28] sm:$0xff] %v283_v38  ;;  %v286_v63 = vmax.f32 %v222_v54, 0.0  ;;  %v287_v0 = vmax.f32 %v223_v55, 0.0  ;;  %v226_v2 = vadd.f32 %v602_v3, %v158_v56  ;;  %v227_v4 = vadd.f32 %v602_v3, %v159_v57 }
  0x10   :  { %348 = vst [vmem:[%s1020_s3 + $0x30] sm:$0xff] %v284_v42  ;;  %v288_v6 = vmax.f32 %v224_v58, 0.0  ;;  %v289_v7 = vmax.f32 %v225_v59, 0.0  ;;  %v228_v8 = vadd.f32 %v602_v3, %v160_v60  ;;  %v229_v9 = vadd.f32 %v602_v3, %v161_v61 }
  0x11   :  { %349 = vst [vmem:[%s1020_s3 + $0x38] sm:$0xff] %v285_v43  ;;  %v290_v11 = vmax.f32 %v226_v2, 0.0  ;;  %v291_v12 = vmax.f32 %v227_v4, 0.0  ;;  %v444_v13 = vunpack.c.l.bf16 %v545_v62  ;;  %v445_v14 = vunpack.c.h.bf16 %v545_v62 }
  0x12   :  { %350 = vst [vmem:[%s1020_s3 + $0x40] sm:$0xff] %v286_v63  ;;  %v292_v16 = vmax.f32 %v228_v8, 0.0  ;;  %v293_v17 = vmax.f32 %v229_v9, 0.0  ;;  %v448_v18 = vunpack.c.l.bf16 %v546_v5  ;;  %v449_v19 = vunpack.c.h.bf16 %v546_v5 }
  0x13   :  { %351 = vst [vmem:[%s1020_s3 + $0x48] sm:$0xff] %v287_v0  ;;  %v162_v20 = vmul.f32 %v597_v1, %v444_v13  ;;  %v163_v21 = vmul.f32 %v597_v1, %v445_v14  ;;  %v452_v22 = vunpack.c.l.bf16 %v547_v10  ;;  %v453_v23 = vunpack.c.h.bf16 %v547_v10  ;;  %v553_v10 = vld [vmem:[%s1017_s0 + $0x80] sm:$0xff]  }
  0x14   :  { %352 = vst [vmem:[%s1020_s3 + $0x50] sm:$0xff] %v288_v6  ;;  %v164_v24 = vmul.f32 %v597_v1, %v448_v18  ;;  %v165_v25 = vmul.f32 %v597_v1, %v449_v19  ;;  %v456_v26 = vunpack.c.l.bf16 %v548_v15  ;;  %v457_v27 = vunpack.c.h.bf16 %v548_v15  ;;  %v554_v15 = vld [vmem:[%s1017_s0 + $0x88] sm:$0xff]  }
  0x15   :  { %353 = vst [vmem:[%s1020_s3 + $0x58] sm:$0xff] %v289_v7  ;;  %v230_v28 = vadd.f32 %v602_v3, %v162_v20  ;;  %v231_v29 = vadd.f32 %v602_v3, %v163_v21  ;;  %v166_v30 = vmul.f32 %v597_v1, %v452_v22  ;;  %v167_v31 = vmul.f32 %v597_v1, %v453_v23  ;;  %v555_v20 = vld [vmem:[%s1017_s0 + $0x90] sm:$0xff]  }
  0x16   :  { %354 = vst [vmem:[%s1020_s3 + $0x60] sm:$0xff] %v290_v11  ;;  %v232_v32 = vadd.f32 %v602_v3, %v164_v24  ;;  %v233_v33 = vadd.f32 %v602_v3, %v165_v25  ;;  %v168_v34 = vmul.f32 %v597_v1, %v456_v26  ;;  %v169_v35 = vmul.f32 %v597_v1, %v457_v27  ;;  %v556_v25 = vld [vmem:[%s1017_s0 + $0x98] sm:$0xff]  }
  0x17   :  { %355 = vst [vmem:[%s1020_s3 + $0x68] sm:$0xff] %v291_v12  ;;  %v294_v37 = vmax.f32 %v230_v28, 0.0  ;;  %v295_v38 = vmax.f32 %v231_v29, 0.0  ;;  %v234_v39 = vadd.f32 %v602_v3, %v166_v30  ;;  %v235_v40 = vadd.f32 %v602_v3, %v167_v31 }
  0x18   :  { %356 = vst [vmem:[%s1020_s3 + $0x70] sm:$0xff] %v292_v16  ;;  %v296_v42 = vmax.f32 %v232_v32, 0.0  ;;  %v297_v43 = vmax.f32 %v233_v33, 0.0  ;;  %v236_v44 = vadd.f32 %v602_v3, %v168_v34  ;;  %v237_v45 = vadd.f32 %v602_v3, %v169_v35 }
  0x19   :  { %357 = vst [vmem:[%s1020_s3 + $0x78] sm:$0xff] %v293_v17  ;;  %v298_v47 = vmax.f32 %v234_v39, 0.0  ;;  %v299_v48 = vmax.f32 %v235_v40, 0.0  ;;  %v460_v49 = vunpack.c.l.bf16 %v549_v36  ;;  %v461_v50 = vunpack.c.h.bf16 %v549_v36 }
  0x1a   :  { %358 = vst [vmem:[%s1020_s3 + $0x80] sm:$0xff] %v294_v37  ;;  %v300_v52 = vmax.f32 %v236_v44, 0.0  ;;  %v301_v53 = vmax.f32 %v237_v45, 0.0  ;;  %v464_v54 = vunpack.c.l.bf16 %v550_v41  ;;  %v465_v55 = vunpack.c.h.bf16 %v550_v41 }
  0x1b   :  { %359 = vst [vmem:[%s1020_s3 + $0x88] sm:$0xff] %v295_v38  ;;  %v170_v56 = vmul.f32 %v597_v1, %v460_v49  ;;  %v171_v57 = vmul.f32 %v597_v1, %v461_v50  ;;  %v468_v58 = vunpack.c.l.bf16 %v551_v46  ;;  %v469_v59 = vunpack.c.h.bf16 %v551_v46  ;;  %v557_v46 = vld [vmem:[%s1017_s0 + $0xa0] sm:$0xff]  }
  0x1c   :  { %360 = vst [vmem:[%s1020_s3 + $0x90] sm:$0xff] %v296_v42  ;;  %v172_v60 = vmul.f32 %v597_v1, %v464_v54  ;;  %v173_v61 = vmul.f32 %v597_v1, %v465_v55  ;;  %v472_v62 = vunpack.c.l.bf16 %v552_v51  ;;  %v473_v63 = vunpack.c.h.bf16 %v552_v51  ;;  %v558_v51 = vld [vmem:[%s1017_s0 + $0xa8] sm:$0xff]  }
  0x1d   :  { %361 = vst [vmem:[%s1020_s3 + $0x98] sm:$0xff] %v297_v43  ;;  %v238_v0 = vadd.f32 %v602_v3, %v170_v56  ;;  %v239_v2 = vadd.f32 %v602_v3, %v171_v57  ;;  %v174_v4 = vmul.f32 %v597_v1, %v468_v58  ;;  %v175_v5 = vmul.f32 %v597_v1, %v469_v59  ;;  %v559_v56 = vld [vmem:[%s1017_s0 + $0xb0] sm:$0xff]  }
  0x1e   :  { %362 = vst [vmem:[%s1020_s3 + $0xa0] sm:$0xff] %v298_v47  ;;  %v240_v6 = vadd.f32 %v602_v3, %v172_v60  ;;  %v241_v7 = vadd.f32 %v602_v3, %v173_v61  ;;  %v176_v8 = vmul.f32 %v597_v1, %v472_v62  ;;  %v177_v9 = vmul.f32 %v597_v1, %v473_v63  ;;  %v560_v61 = vld [vmem:[%s1017_s0 + $0xb8] sm:$0xff]  }
  0x1f   :  { %363 = vst [vmem:[%s1020_s3 + $0xa8] sm:$0xff] %v299_v48  ;;  %v302_v11 = vmax.f32 %v238_v0, 0.0  ;;  %v303_v12 = vmax.f32 %v239_v2, 0.0  ;;  %v242_v13 = vadd.f32 %v602_v3, %v174_v4  ;;  %v243_v14 = vadd.f32 %v602_v3, %v175_v5 }
  0x20   :  { %364 = vst [vmem:[%s1020_s3 + $0xb0] sm:$0xff] %v300_v52  ;;  %v304_v16 = vmax.f32 %v240_v6, 0.0  ;;  %v305_v17 = vmax.f32 %v241_v7, 0.0  ;;  %v244_v18 = vadd.f32 %v602_v3, %v176_v8  ;;  %v245_v19 = vadd.f32 %v602_v3, %v177_v9 }
  0x21   :  { %365 = vst [vmem:[%s1020_s3 + $0xb8] sm:$0xff] %v301_v53  ;;  %v306_v21 = vmax.f32 %v242_v13, 0.0  ;;  %v307_v22 = vmax.f32 %v243_v14, 0.0  ;;  %v476_v23 = vunpack.c.l.bf16 %v553_v10  ;;  %v477_v24 = vunpack.c.h.bf16 %v553_v10 }
  0x22   :  { %366 = vst [vmem:[%s1020_s3 + $0xc0] sm:$0xff] %v302_v11  ;;  %v308_v26 = vmax.f32 %v244_v18, 0.0  ;;  %v309_v27 = vmax.f32 %v245_v19, 0.0  ;;  %v480_v28 = vunpack.c.l.bf16 %v554_v15  ;;  %v481_v29 = vunpack.c.h.bf16 %v554_v15 }
  0x23   :  { %367 = vst [vmem:[%s1020_s3 + $0xc8] sm:$0xff] %v303_v12  ;;  %v178_v30 = vmul.f32 %v597_v1, %v476_v23  ;;  %v179_v31 = vmul.f32 %v597_v1, %v477_v24  ;;  %v484_v32 = vunpack.c.l.bf16 %v555_v20  ;;  %v485_v33 = vunpack.c.h.bf16 %v555_v20  ;;  %v561_v20 = vld [vmem:[%s1017_s0 + $0xc0] sm:$0xff]  }
  0x24   :  { %368 = vst [vmem:[%s1020_s3 + $0xd0] sm:$0xff] %v304_v16  ;;  %v180_v34 = vmul.f32 %v597_v1, %v480_v28  ;;  %v181_v35 = vmul.f32 %v597_v1, %v481_v29  ;;  %v488_v36 = vunpack.c.l.bf16 %v556_v25  ;;  %v489_v37 = vunpack.c.h.bf16 %v556_v25  ;;  %v562_v25 = vld [vmem:[%s1017_s0 + $0xc8] sm:$0xff]  }
  0x25   :  { %369 = vst [vmem:[%s1020_s3 + $0xd8] sm:$0xff] %v305_v17  ;;  %v246_v38 = vadd.f32 %v602_v3, %v178_v30  ;;  %v247_v39 = vadd.f32 %v602_v3, %v179_v31  ;;  %v182_v40 = vmul.f32 %v597_v1, %v484_v32  ;;  %v183_v41 = vmul.f32 %v597_v1, %v485_v33  ;;  %v563_v30 = vld [vmem:[%s1017_s0 + $0xd0] sm:$0xff]  }
  0x26   :  { %370 = vst [vmem:[%s1020_s3 + $0xe0] sm:$0xff] %v306_v21  ;;  %v248_v42 = vadd.f32 %v602_v3, %v180_v34  ;;  %v249_v43 = vadd.f32 %v602_v3, %v181_v35  ;;  %v184_v44 = vmul.f32 %v597_v1, %v488_v36  ;;  %v185_v45 = vmul.f32 %v597_v1, %v489_v37  ;;  %v564_v35 = vld [vmem:[%s1017_s0 + $0xd8] sm:$0xff]  }
  0x27   :  { %371 = vst [vmem:[%s1020_s3 + $0xe8] sm:$0xff] %v307_v22  ;;  %v310_v47 = vmax.f32 %v246_v38, 0.0  ;;  %v311_v48 = vmax.f32 %v247_v39, 0.0  ;;  %v250_v49 = vadd.f32 %v602_v3, %v182_v40  ;;  %v251_v50 = vadd.f32 %v602_v3, %v183_v41 }
  0x28   :  { %372 = vst [vmem:[%s1020_s3 + $0xf0] sm:$0xff] %v308_v26  ;;  %v312_v52 = vmax.f32 %v248_v42, 0.0  ;;  %v313_v53 = vmax.f32 %v249_v43, 0.0  ;;  %v252_v54 = vadd.f32 %v602_v3, %v184_v44  ;;  %v253_v55 = vadd.f32 %v602_v3, %v185_v45 }
  0x29   :  { %373 = vst [vmem:[%s1020_s3 + $0xf8] sm:$0xff] %v309_v27  ;;  %v314_v57 = vmax.f32 %v250_v49, 0.0  ;;  %v315_v58 = vmax.f32 %v251_v50, 0.0  ;;  %v492_v59 = vunpack.c.l.bf16 %v557_v46  ;;  %v493_v60 = vunpack.c.h.bf16 %v557_v46 }
  0x2a   :  { %374 = vst [vmem:[%s1020_s3 + $0x100] sm:$0xff] %v310_v47  ;;  %v316_v62 = vmax.f32 %v252_v54, 0.0  ;;  %v317_v63 = vmax.f32 %v253_v55, 0.0  ;;  %v496_v0 = vunpack.c.l.bf16 %v558_v51  ;;  %v497_v2 = vunpack.c.h.bf16 %v558_v51 }
  0x2b   :  { %375 = vst [vmem:[%s1020_s3 + $0x108] sm:$0xff] %v311_v48  ;;  %v186_v4 = vmul.f32 %v597_v1, %v492_v59  ;;  %v187_v5 = vmul.f32 %v597_v1, %v493_v60  ;;  %v500_v6 = vunpack.c.l.bf16 %v559_v56  ;;  %v501_v7 = vunpack.c.h.bf16 %v559_v56  ;;  %v565_v56 = vld [vmem:[%s1017_s0 + $0xe0] sm:$0xff]  }
  0x2c   :  { %376 = vst [vmem:[%s1020_s3 + $0x110] sm:$0xff] %v312_v52  ;;  %v188_v8 = vmul.f32 %v597_v1, %v496_v0  ;;  %v189_v9 = vmul.f32 %v597_v1, %v497_v2  ;;  %v504_v10 = vunpack.c.l.bf16 %v560_v61  ;;  %v505_v11 = vunpack.c.h.bf16 %v560_v61  ;;  %v566_v61 = vld [vmem:[%s1017_s0 + $0xe8] sm:$0xff]  }
  0x2d   :  { %377 = vst [vmem:[%s1020_s3 + $0x118] sm:$0xff] %v313_v53  ;;  %v254_v12 = vadd.f32 %v602_v3, %v186_v4  ;;  %v255_v13 = vadd.f32 %v602_v3, %v187_v5  ;;  %v190_v14 = vmul.f32 %v597_v1, %v500_v6  ;;  %v191_v15 = vmul.f32 %v597_v1, %v501_v7  ;;  %v567_v4 = vld [vmem:[%s1017_s0 + $0xf0] sm:$0xff]  }
  0x2e   :  { %378 = vst [vmem:[%s1020_s3 + $0x120] sm:$0xff] %v314_v57  ;;  %v256_v16 = vadd.f32 %v602_v3, %v188_v8  ;;  %v257_v17 = vadd.f32 %v602_v3, %v189_v9  ;;  %v192_v18 = vmul.f32 %v597_v1, %v504_v10  ;;  %v193_v19 = vmul.f32 %v597_v1, %v505_v11  ;;  %v568_v9 = vld [vmem:[%s1017_s0 + $0xf8] sm:$0xff]  }
  0x2f   :  { %379 = vst [vmem:[%s1020_s3 + $0x128] sm:$0xff] %v315_v58  ;;  %v318_v21 = vmax.f32 %v254_v12, 0.0  ;;  %v319_v22 = vmax.f32 %v255_v13, 0.0  ;;  %v258_v23 = vadd.f32 %v602_v3, %v190_v14  ;;  %v259_v24 = vadd.f32 %v602_v3, %v191_v15 }
  0x30   :  { %380 = vst [vmem:[%s1020_s3 + $0x130] sm:$0xff] %v316_v62  ;;  %v320_v26 = vmax.f32 %v256_v16, 0.0  ;;  %v321_v27 = vmax.f32 %v257_v17, 0.0  ;;  %v260_v28 = vadd.f32 %v602_v3, %v192_v18  ;;  %v261_v29 = vadd.f32 %v602_v3, %v193_v19 }
  0x31   :  { %381 = vst [vmem:[%s1020_s3 + $0x138] sm:$0xff] %v317_v63  ;;  %v322_v31 = vmax.f32 %v258_v23, 0.0  ;;  %v323_v32 = vmax.f32 %v259_v24, 0.0  ;;  %v508_v33 = vunpack.c.l.bf16 %v561_v20  ;;  %v509_v34 = vunpack.c.h.bf16 %v561_v20 }
  0x32   :  { %382 = vst [vmem:[%s1020_s3 + $0x140] sm:$0xff] %v318_v21  ;;  %v324_v36 = vmax.f32 %v260_v28, 0.0  ;;  %v325_v37 = vmax.f32 %v261_v29, 0.0  ;;  %v512_v38 = vunpack.c.l.bf16 %v562_v25  ;;  %v513_v39 = vunpack.c.h.bf16 %v562_v25 }
  0x33   :  { %383 = vst [vmem:[%s1020_s3 + $0x148] sm:$0xff] %v319_v22  ;;  %v194_v40 = vmul.f32 %v597_v1, %v508_v33  ;;  %v195_v41 = vmul.f32 %v597_v1, %v509_v34  ;;  %v516_v42 = vunpack.c.l.bf16 %v563_v30  ;;  %v517_v43 = vunpack.c.h.bf16 %v563_v30 }
  0x34   :  { %384 = vst [vmem:[%s1020_s3 + $0x150] sm:$0xff] %v320_v26  ;;  %v196_v44 = vmul.f32 %v597_v1, %v512_v38  ;;  %v197_v45 = vmul.f32 %v597_v1, %v513_v39  ;;  %v520_v46 = vunpack.c.l.bf16 %v564_v35  ;;  %v521_v47 = vunpack.c.h.bf16 %v564_v35 }
  0x35   :  { %385 = vst [vmem:[%s1020_s3 + $0x158] sm:$0xff] %v321_v27  ;;  %v262_v48 = vadd.f32 %v602_v3, %v194_v40  ;;  %v263_v49 = vadd.f32 %v602_v3, %v195_v41  ;;  %v198_v50 = vmul.f32 %v597_v1, %v516_v42  ;;  %v199_v51 = vmul.f32 %v597_v1, %v517_v43 }
  0x36   :  { %386 = vst [vmem:[%s1020_s3 + $0x160] sm:$0xff] %v322_v31  ;;  %v264_v52 = vadd.f32 %v602_v3, %v196_v44  ;;  %v265_v53 = vadd.f32 %v602_v3, %v197_v45  ;;  %v200_v54 = vmul.f32 %v597_v1, %v520_v46  ;;  %v201_v55 = vmul.f32 %v597_v1, %v521_v47 }
  0x37   :  { %387 = vst [vmem:[%s1020_s3 + $0x168] sm:$0xff] %v323_v32  ;;  %v326_v57 = vmax.f32 %v262_v48, 0.0  ;;  %v327_v58 = vmax.f32 %v263_v49, 0.0  ;;  %v266_v59 = vadd.f32 %v602_v3, %v198_v50  ;;  %v267_v60 = vadd.f32 %v602_v3, %v199_v51 }
  0x38   :  { %388 = vst [vmem:[%s1020_s3 + $0x170] sm:$0xff] %v324_v36  ;;  %v328_v62 = vmax.f32 %v264_v52, 0.0  ;;  %v329_v63 = vmax.f32 %v265_v53, 0.0  ;;  %v268_v0 = vadd.f32 %v602_v3, %v200_v54  ;;  %v269_v2 = vadd.f32 %v602_v3, %v201_v55 }
  0x39   :  { %389 = vst [vmem:[%s1020_s3 + $0x178] sm:$0xff] %v325_v37  ;;  %v330_v5 = vmax.f32 %v266_v59, 0.0  ;;  %v331_v6 = vmax.f32 %v267_v60, 0.0  ;;  %v524_v7 = vunpack.c.l.bf16 %v565_v56  ;;  %v525_v8 = vunpack.c.h.bf16 %v565_v56 }
  0x3a   :  { %390 = vst [vmem:[%s1020_s3 + $0x180] sm:$0xff] %v326_v57  ;;  %v332_v10 = vmax.f32 %v268_v0, 0.0  ;;  %v333_v11 = vmax.f32 %v269_v2, 0.0  ;;  %v528_v12 = vunpack.c.l.bf16 %v566_v61  ;;  %v529_v13 = vunpack.c.h.bf16 %v566_v61 }
  0x3b   :  { %391 = vst [vmem:[%s1020_s3 + $0x188] sm:$0xff] %v327_v58  ;;  %v202_v14 = vmul.f32 %v597_v1, %v524_v7  ;;  %v203_v15 = vmul.f32 %v597_v1, %v525_v8  ;;  %v532_v16 = vunpack.c.l.bf16 %v567_v4  ;;  %v533_v17 = vunpack.c.h.bf16 %v567_v4 }
  0x3c   :  { %392 = vst [vmem:[%s1020_s3 + $0x190] sm:$0xff] %v328_v62  ;;  %v204_v18 = vmul.f32 %v597_v1, %v528_v12  ;;  %v205_v19 = vmul.f32 %v597_v1, %v529_v13  ;;  %v536_v20 = vunpack.c.l.bf16 %v568_v9  ;;  %v537_v21 = vunpack.c.h.bf16 %v568_v9 }
  0x3d   :  { %393 = vst [vmem:[%s1020_s3 + $0x198] sm:$0xff] %v329_v63  ;;  %v270_v22 = vadd.f32 %v602_v3, %v202_v14  ;;  %v271_v23 = vadd.f32 %v602_v3, %v203_v15  ;;  %v206_v24 = vmul.f32 %v597_v1, %v532_v16  ;;  %v207_v25 = vmul.f32 %v597_v1, %v533_v17 }
  0x3e   :  { %394 = vst [vmem:[%s1020_s3 + $0x1a0] sm:$0xff] %v330_v5  ;;  %v272_v26 = vadd.f32 %v602_v3, %v204_v18  ;;  %v273_v27 = vadd.f32 %v602_v3, %v205_v19  ;;  %v208_v28 = vmul.f32 %v597_v1, %v536_v20  ;;  %v209_v29 = vmul.f32 %v597_v1, %v537_v21 }
  0x3f   :  { %395 = vst [vmem:[%s1020_s3 + $0x1a8] sm:$0xff] %v331_v6  ;;  %v334_v30 = vmax.f32 %v270_v22, 0.0  ;;  %v335_v31 = vmax.f32 %v271_v23, 0.0  ;;  %v274_v32 = vadd.f32 %v602_v3, %v206_v24  ;;  %v275_v33 = vadd.f32 %v602_v3, %v207_v25 }
  0x40   :  { %396 = vst [vmem:[%s1020_s3 + $0x1b0] sm:$0xff] %v332_v10  ;;  %v336_v34 = vmax.f32 %v272_v26, 0.0  ;;  %v337_v35 = vmax.f32 %v273_v27, 0.0  ;;  %v276_v36 = vadd.f32 %v602_v3, %v208_v28  ;;  %v277_v1 = vadd.f32 %v602_v3, %v209_v29 }
  0x41   :  { %397 = vst [vmem:[%s1020_s3 + $0x1b8] sm:$0xff] %v333_v11  ;;  %v338_v37 = vmax.f32 %v274_v32, 0.0  ;;  %v339_v38 = vmax.f32 %v275_v33, 0.0 }
  0x42   :  { %398 = vst [vmem:[%s1020_s3 + $0x1c0] sm:$0xff] %v334_v30  ;;  %v340_v39 = vmax.f32 %v276_v36, 0.0  ;;  %v341_v3 = vmax.f32 %v277_v1, 0.0 }
  0x43   :  { %399 = vst [vmem:[%s1020_s3 + $0x1c8] sm:$0xff] %v335_v31 }
  0x44   :  { %400 = vst [vmem:[%s1020_s3 + $0x1d0] sm:$0xff] %v336_v34 }
  0x45   :  { %401 = vst [vmem:[%s1020_s3 + $0x1d8] sm:$0xff] %v337_v35 }
  0x46   :  { %402 = vst [vmem:[%s1020_s3 + $0x1e0] sm:$0xff] %v338_v37 }
  0x47   :  { %403 = vst [vmem:[%s1020_s3 + $0x1e8] sm:$0xff] %v339_v38 }
  0x48   :  { %404 = vst [vmem:[%s1020_s3 + $0x1f0] sm:$0xff] %v340_v39 }
  0x49   :  { %405 = vst [vmem:[%s1020_s3 + $0x1f8] sm:$0xff] %v341_v3 }

// kernel: conv_block_forward_nhwc.2
= control target key start
LH: loop header
LB: loop body
LE: loop exit
PB: predicated region body
PF: predicated region fallthrough
CT: control target
= control target key end

     0   :  { %s2216_s12 = smov 0   ;;  %s2218_s13 = smov 0   ;;  %s3190_s0 = inlined_call_operand.vmem [shape: bf16[2,1,18,18,4], index: 0, kind: input, shape index: {}]   ;;  %s3191_s1 = inlined_call_operand.vmem [shape: bf16[36,128], index: 1, kind: input, shape index: {}]   ;;  %s3192_s2 = inlined_call_operand.vmem [shape: bf16[2,16,16,128], index: 2, kind: output, shape index: {0}]   ;;  %s3193_s3 = inlined_call_operand.vmem [shape: f32[2,1,8,128], index: 3, kind: output, shape index: {1}]  }
   0x1   :  { %s2220_s14 = smov 0  }
   0x2 LB: > { %s26_s15 = sadd.s32 1, %s2181_s13  ;;  %p1898_p0 = scmp.ge.s32.totalorder %s2185_s14, 1  ;;  %s2185_s14 = sphi %s2220_s14, %s14_s14   ;;  %s2181_s13 = sphi %s2218_s13, %s3195_s13   ;;  %s2177_s12 = sphi %s2216_s12, %s3194_s12  }
   0x3   : > { %p28_p1 = scmp.ge.s32.totalorder %s26_s15, 2  ;;  %p162_p2 = scmp.lt.s32.totalorder %s2185_s14, 3 }
   0x5   : > { %s3197_s15 = smov (%p28_p1, %s26_s15), 0  ;;  %p163_p3 = pnand %p1898_p0, %p162_p2 }
   0x6   : > { %p202_p4 = scmp.lt.s32.totalorder (!%p163_p3), %s2177_s12, 1  ;;  %s2187_s20 = smov (!%p163_p3), 12  }
   0x7   : > { %166 = sbr.rel (%p163_p3) target bundleno = 717 (0x2cd), region = 28  ;;  %s2188_s21 = smov (!%p163_p3), 20  }
   0x8   : > { %s2189_s22 = smov (!%p163_p3), 4   ;;  %s2190_s23 = smov (!%p163_p3), 8  }
   0x9   : > { %s2191_s24 = smov (!%p163_p3), 24   ;;  %s2192_s25 = smov (!%p163_p3), 16  }
   0xa   : > { %s2193_s26 = smov (!%p163_p3), 32   ;;  %s2194_s27 = smov (!%p163_p3), 28  }
   0xc   : > { %s3199_s12 = smov (!%p202_p4, %s2177_s12), 1  ;;  %vm637_vm0 = vcmask 1046528   ;;  %vm412_vm1 = vsmask.f32 7424  ;;  %vm1273_vm2 = vcmask 1041408   ;;  %vm956_vm3 = vcmask 31744  }
   0xd   : > { %s2126_s16 = smul.u32 216, %s3199_s12  ;;  %vm989_vm4 = vcmask 64512   ;;  %vm1022_vm5 = vcmask 97280   ;;  %vm1055_vm6 = vcmask 130048   ;;  %vm1088_vm7 = vcmask 162816   ;;  %s2001_s7 = sshll.u32 %s3199_s12, 7 }
   0xe   : > { %vm1121_vm8 = vcmask 195584   ;;  %vm1154_vm9 = vcmask 228352   ;;  %vm1187_vm10 = vcmask 261120   ;;  %vm1240_vm11 = vcmask 293888   ;;  %s2794_s10 = scalar_lea.vmem %s3192_s2, %s2001_s7  ;;  %s1902_s11 = sshll.u32 %s3199_s12, 3 }
   0xf   : > { %s2240_s19 = scalar_lea.vmem %s3190_s0, %s2126_s16  ;;  %s228_s18 = scalar_lea.vmem %s3193_s3, %s1902_s11 }
  0x10   : > { %v2243_v0 = vld [vmem:[%s2240_s19 + $0xc] sm:$0xff]  ;;  %v235_v1 = vld [vmem:[%s2240_s19 + $0x14] sm:$0x1]  ;;  %v2247_v2 = vld [vmem:[%s2240_s19] sm:$0xff] }
  0x11   : > { %v381_v3 = vunpack.c.l.b16 %v235_v1  ;;  %v232_v4 = vld [vmem:[%s2240_s19 + $0x8] sm:$0x1]  ;;  %v2251_v5 = vld [vmem:[%s2240_s19 + $0x18] sm:$0xff]  ;;  %v238_v6 = vld [vmem:[%s2240_s19 + $0x20] sm:$0x1]  ;;  %v414_v8 = vshrl.u32 %v2247_v2, 16  ;;  %723 = vrot.lane.b32.xlu2 %v2243_v0, %s2187_s20 }
  0x12   : > { %v380_v7 = vunpack.c.l.b16 %v232_v4  ;;  %v416_v9 = vshll.u32 %v2247_v2, 16  ;;  %v641_v11 = vrot.slane %v2243_v0, 1  ;;  %v382_v12 = vunpack.c.l.b16 %v238_v6  ;;  %v241_v14 = vld [vmem:[%s2240_s19 + $0x2c] sm:$0x1]  ;;  %v2264_v22 = vld [vmem:[%s2240_s19 + $0x24] sm:$0xff]  ;;  %v2284_v47 = vld [vmem:[%s2240_s19 + $0x30] sm:$0xff] }
  0x13   : > { %v397_v10 = vpack.c.b16 %v381_v3, %v381_v3  ;;  %v440_v13 = vshll.u32 %v2251_v5, 16  ;;  %v428_v17 = vshll.u32 %v2243_v0, 16  ;;  %v438_v20 = vshrl.u32 %v2251_v5, 16  ;;  %v244_v38 = vld [vmem:[%s2240_s19 + $0x38] sm:$0x1]  ;;  %v2309_v3 = vld [vmem:[%s2240_s19 + $0x3c] sm:$0xff] }
  0x14   : > { %v396_v15 = vpack.c.b16 %v380_v7, %v380_v7  ;;  %v418_v16 = vrot.slane %v416_v9, 1  ;;  %v398_v19 = vpack.c.b16 %v382_v12, %v382_v12  ;;  %v383_v25 = vunpack.c.l.b16 %v241_v14  ;;  %v247_v62 = vld [vmem:[%s2240_s19 + $0x44] sm:$0x1] }
  0x15   : > { %v642_v18 = vrot.slane %v397_v10, 1  ;;  %v442_v21 = vrot.slane %v440_v13, 1  ;;  %v426_v28 = vshrl.u32 %v2243_v0, 16  ;;  %v430_v30 = vrot.slane %v428_v17, 1 }
  0x16   : > { %v419_v23 = vor.u32 %v418_v16, %v414_v8  ;;  %v421_v24 = vshll.u32 %v396_v15, 16  ;;  %v445_v27 = vshll.u32 %v398_v19, 16  ;;  %v433_v31 = vshll.u32 %v397_v10, 16  ;;  %v250_v16 = vld [vmem:[%s2240_s19 + $0x50] sm:$0x1] }
  0x17   : > { %v2267_v26 = vsel %vm637_vm0, %v641_v11, %v642_v18  ;;  %v2272_v32 = vpack.c.b16 %v383_v25, %v383_v25  ;;  %v443_v33 = vor.u32 %v442_v21, %v438_v20  ;;  %v452_v35 = vshll.u32 %v2264_v22, 16  ;;  %v2333_v18 = vld [vmem:[%s2240_s19 + $0x48] sm:$0xff] }
  0x18   : > { %805 = vrot.lane.b32.xlu1 %v2267_v26, %s2188_s21  ;;  %v423_v29 = vrot.slane %v421_v24, 1  ;;  %v447_v34 = vrot.slane %v445_v27, 1  ;;  %v638_v37 = vrot.slane %v2247_v2, 1  ;;  %v639_v39 = vrot.slane %v396_v15, 1  ;;  %v256_v25 = vld [vmem:[%s2240_s19 + $0x68] sm:$0x1] }
  0x19   : > { %v431_v40 = vor.u32 %v430_v30, %v426_v28  ;;  %v435_v41 = vrot.slane %v433_v31, 1  ;;  %v450_v42 = vshrl.u32 %v2264_v22, 16  ;;  %v457_v43 = vshll.u32 %v2272_v32, 16  ;;  %v2348_v30 = vld [vmem:[%s2240_s19 + $0x60] sm:$0xff] }
  0x1a   : > { %v424_v36 = vsel %vm412_vm1, %v419_v23, %v423_v29  ;;  %v448_v44 = vsel %vm412_vm1, %v443_v33, %v447_v34  ;;  %v454_v45 = vrot.slane %v452_v35, 1  ;;  %v640_v46 = vsel %vm637_vm0, %v638_v37, %v639_v39  ;;  %v259_v37 = vld [vmem:[%s2240_s19 + $0x74] sm:$0x1] }
  0x1b   : > { %605 = vrot.lane.b32.xlu0 %v424_v36, %s2189_s22  ;;  %v384_v48 = vunpack.c.l.b16 %v244_v38  ;;  %686 = vrot.lane.b32.xlu2 %v640_v46, %s2190_s23  ;;  %v464_v49 = vshll.u32 %v2284_v47, 16  ;;  %v436_v50 = vsel %vm412_vm1, %v431_v40, %v435_v41  ;;  %v459_v52 = vrot.slane %v457_v43, 1 }
  0x1c   : > { %v455_v51 = vor.u32 %v454_v45, %v450_v42  ;;  %v462_v54 = vshrl.u32 %v2284_v47, 16  ;;  %v644_v60 = vrot.slane %v2251_v5, 1  ;;  %v645_v61 = vrot.slane %v398_v19, 1  ;;  %v2363_v42 = vld [vmem:[%s2240_s19 + $0x6c] sm:$0xff] }
  0x1d   : > { %v400_v53 = vpack.c.b16 %v384_v48, %v384_v48  ;;  %v466_v55 = vrot.slane %v464_v49, 1  ;;  %v385_v4 = vunpack.c.l.b16 %v247_v62  ;;  %v476_v6 = vshll.u32 %v2309_v3, 16 }
  0x1e   : > { %v2293_v57 = vsel %vm412_vm1, %v455_v51, %v459_v52  ;;  %v2306_v1 = vsel %vm637_vm0, %v644_v60, %v645_v61  ;;  %v650_v7 = vrot.slane %v2284_v47, 1  ;;  %v474_v10 = vshrl.u32 %v2309_v3, 16 }
  0x1f   : > { %v469_v56 = vshll.u32 %v400_v53, 16  ;;  %v467_v58 = vor.u32 %v466_v55, %v462_v54  ;;  %v651_v8 = vrot.slane %v400_v53, 1  ;;  %v401_v9 = vpack.c.b16 %v385_v4, %v385_v4 }
  0x20   : > { %609 = vrot.lane.b32.xlu1 %v448_v44, %s2189_s22  ;;  %v478_v11 = vrot.slane %v476_v6, 1  ;;  %v386_v19 = vunpack.c.l.b16 %v250_v16  ;;  %v488_v20 = vshll.u32 %v2333_v18, 16  ;;  %v653_v21 = vrot.slane %v2309_v3, 1  ;;  %v262_v6 = vld [vmem:[%s2240_s19 + $0x80] sm:$0x1] }
  0x21   : > { %v471_v59 = vrot.slane %v469_v56, 1  ;;  %v481_v12 = vshll.u32 %v401_v9, 16  ;;  %v2320_v13 = vsel %vm637_vm0, %v650_v7, %v651_v8  ;;  %v654_v23 = vrot.slane %v401_v9, 1  ;;  %v2404_v9 = vld [vmem:[%s2240_s19 + $0x78] sm:$0xff] }
  0x22   : > { %v479_v14 = vor.u32 %v478_v11, %v474_v10  ;;  %v402_v24 = vpack.c.b16 %v386_v19, %v386_v19  ;;  %v490_v27 = vrot.slane %v488_v20, 1  ;;  %v388_v31 = vunpack.c.l.b16 %v256_v25 }
  0x23   : > { %607 = vrot.lane.b32.xlu0 %v436_v50, %s2189_s22  ;;  %842 = vrot.lane.b32.xlu2 %v2251_v5, %s2191_s24  ;;  %v2303_v63 = vsel %vm412_vm1, %v467_v58, %v471_v59  ;;  %v483_v15 = vrot.slane %v481_v12, 1  ;;  %v2345_v29 = vsel %vm637_vm0, %v653_v21, %v654_v23  ;;  %v512_v35 = vshll.u32 %v2348_v30, 16 }
  0x24   : > { %v493_v28 = vshll.u32 %v402_v24, 16  ;;  %v404_v36 = vpack.c.b16 %v388_v31, %v388_v31  ;;  %v510_v39 = vshrl.u32 %v2348_v30, 16  ;;  %v389_v43 = vunpack.c.l.b16 %v259_v37  ;;  %v2448_v37 = vld [vmem:[%s2240_s19 + $0x54] sm:$0xff] }
  0x25   : > { %v2330_v17 = vsel %vm412_vm1, %v479_v14, %v483_v15  ;;  %v514_v40 = vrot.slane %v512_v35, 1  ;;  %v524_v46 = vshll.u32 %v2363_v42, 16  ;;  %v656_v48 = vrot.slane %v2333_v18, 1 }
  0x26   : > { %v495_v34 = vrot.slane %v493_v28, 1  ;;  %v517_v41 = vshll.u32 %v404_v36, 16  ;;  %v657_v49 = vrot.slane %v402_v24, 1  ;;  %v522_v52 = vshrl.u32 %v2363_v42, 16  ;;  %v1224_v28 = vld [vmem:[%s3191_s1 + $0x10] sm:$0x3] }
  0x27   : > { %v526_v53 = vrot.slane %v524_v46, 1  ;;  %v647_v55 = vrot.slane %v2264_v22, 1  ;;  %v648_v56 = vrot.slane %v2272_v32, 1  ;;  %v662_v62 = vrot.slane %v2348_v30, 1 }
  0x28   : > { %611 = vrot.lane.b32.xlu1 %v2293_v57, %s2189_s22  ;;  %v519_v45 = vrot.slane %v517_v41, 1  ;;  %v2380_v58 = vsel %vm637_vm0, %v656_v48, %v657_v49  ;;  %v663_v4 = vrot.slane %v404_v36, 1  ;;  %v390_v8 = vunpack.c.l.b16 %v262_v6 }
  0x29   : > { %v527_v59 = vor.u32 %v526_v53, %v522_v52  ;;  %v2387_v61 = vsel %vm637_vm0, %v647_v55, %v648_v56  ;;  %v665_v10 = vrot.slane %v2363_v42, 1  ;;  %v536_v14 = vshll.u32 %v2404_v9, 16 }
  0x2a   : > { %v2401_v7 = vsel %vm637_vm0, %v662_v62, %v663_v4  ;;  %v406_v12 = vpack.c.b16 %v390_v8, %v390_v8  ;;  %v534_v16 = vshrl.u32 %v2404_v9, 16  ;;  %v498_v46 = vshrl.u32 %v2448_v37, 16 }
  0x2b   : > { %770 = vrot.lane.b32.xlu0 %v436_v50, %s2192_s25  ;;  %613 = vrot.lane.b32.xlu2 %v2303_v63, %s2189_s22  ;;  %v405_v50 = vpack.c.b16 %v389_v43, %v389_v43  ;;  %v538_v19 = vrot.slane %v536_v14, 1  ;;  %v500_v43 = vshll.u32 %v2448_v37, 16 }
  0x2c   : > { %v541_v20 = vshll.u32 %v406_v12, 16 }
  0x2d   : > { %v529_v54 = vshll.u32 %v405_v50, 16  ;;  %v666_v11 = vrot.slane %v405_v50, 1  ;;  %v539_v21 = vor.u32 %v538_v19, %v534_v16  ;;  %v502_v48 = vrot.slane %v500_v43, 1  ;;  %v2468_v50 = vld [vmem:[%s2240_s19 + $0x90] sm:$0xff]  ;;  %v271_v16 = vld [vmem:[%s2240_s19 + $0xa4] sm:$0x1] }
  0x2e   : > { %v543_v23 = vrot.slane %v541_v20, 1  ;;  %v659_v20 = vrot.slane %v2448_v37, 1 }
  0x2f   : > { %v531_v60 = vrot.slane %v529_v54, 1  ;;  %v2415_v15 = vsel %vm637_vm0, %v665_v10, %v666_v11  ;;  %v503_v54 = vor.u32 %v502_v48, %v498_v46 }
  0x30   : > { %924 = vrot.lane.b32.xlu1 %v2306_v1, %s2193_s26  ;;  %v2427_v25 = vsel %vm412_vm1, %v539_v21, %v543_v23 }
  0x31   : > { %v2392_v32 = vsel %vm412_vm1, %v527_v59, %v531_v60  ;;  %v558_v60 = vshrl.u32 %v2468_v50, 16 }
  0x33   : > { %889 = vrot.lane.b32.xlu0 %v448_v44, %s2194_s27  ;;  %725 = vrot.lane.b32.xlu2 %v2251_v5, %s2187_s20 }
  0x38   : > { %694 = vrot.lane.b32.xlu1 %v2320_v13, %s2190_s23 }
  0x3b   : > { %688 = vrot.lane.b32.xlu0 %v2267_v26, %s2190_s23  ;;  %778 = vrot.lane.b32.xlu2 %v2330_v17, %s2192_s25  ;;  %v486_v26 = vshrl.u32 %v2333_v18, 16 }
  0x3d   : > { %v491_v33 = vor.u32 %v490_v27, %v486_v26  ;;  %v668_v26 = vrot.slane %v2404_v9, 1  ;;  %v669_v27 = vrot.slane %v406_v12, 1 }
  0x3f   : > { %v2359_v38 = vsel %vm412_vm1, %v491_v33, %v495_v34  ;;  %v1234_v33 = vunpack.c.l.b16 %v1224_v28  ;;  %v253_v34 = vld [vmem:[%s2240_s19 + $0x5c] sm:$0x1] }
  0x40   : > { %772 = vrot.lane.b32.xlu1 %v448_v44, %s2192_s25  ;;  %v515_v44 = vor.u32 %v514_v40, %v510_v39  ;;  %v387_v39 = vunpack.c.l.b16 %v253_v34 }
  0x41   : > { %v1237_v35 = vpack.c.b16 %v1234_v33, %v1234_v33 }
  0x42   : > { %v2374_v51 = vsel %vm412_vm1, %v515_v44, %v519_v45  ;;  %v403_v41 = vpack.c.b16 %v387_v39, %v387_v39  ;;  %v268_v44 = vld [vmem:[%s2240_s19 + $0x98] sm:$0x1]  ;;  %v2020_v45 = vld [vmem:[%s3191_s1] sm:$0xff] }
  0x43   : > { %731 = vrot.lane.b32.xlu0 %v2309_v3, %s2187_s20  ;;  %844 = vrot.lane.b32.xlu2 %v2264_v22, %s2191_s24  ;;  %v1275_v36 = vsel %vm1273_vm2, %v1237_v35, 0  ;;  %v392_v52 = vunpack.c.l.b16 %v268_v44 }
  0x44   : > { %1282 = vmatpush.bf16.msra.mxu0 %v1275_v36  ;;  %2117 = vmatpush.bf16.msra.mxu1 %v1275_v36  ;;  %v505_v49 = vshll.u32 %v403_v41, 16  ;;  %v660_v21 = vrot.slane %v403_v41, 1 }
  0x45   : > { %2118 = vmatpush.bf16.msra.mxu2 %v1275_v36  ;;  %2119 = vmatpush.bf16.msra.mxu3 %v1275_v36  ;;  %v408_v56 = vpack.c.b16 %v392_v52, %v392_v52  ;;  %v674_v36 = vrot.slane %v2468_v50, 1 }
  0x46   : > { %v507_v55 = vrot.slane %v505_v49, 1  ;;  %v2511_v34 = vsel %vm637_vm0, %v659_v20, %v660_v21 }
  0x47   : > { %v565_v4 = vshll.u32 %v408_v56, 16  ;;  %v675_v39 = vrot.slane %v408_v56, 1 }
  0x48   : > { %813 = vrot.lane.b32.xlu1 %v2345_v29, %s2188_s21  ;;  %v2481_v8 = vsel %vm412_vm1, %v503_v54, %v507_v55  ;;  %v265_v55 = vld [vmem:[%s2240_s19 + $0x8c] sm:$0x1] }
  0x49   : > { %v567_v11 = vrot.slane %v565_v4, 1  ;;  %v2524_v48 = vsel %vm637_vm0, %v674_v36, %v675_v39  ;;  %v391_v4 = vunpack.c.l.b16 %v265_v55 }
  0x4b   : > { %807 = vrot.lane.b32.xlu0 %v2306_v1, %s2188_s21  ;;  %897 = vrot.lane.b32.xlu2 %v2359_v38, %s2194_s27 }
  0x50   : > { %891 = vrot.lane.b32.xlu1 %v2293_v57, %s2194_s27 }
  0x53   : > { %850 = vrot.lane.b32.xlu0 %v2333_v18, %s2191_s24  ;;  %621 = vrot.lane.b32.xlu2 %v2374_v51, %s2189_s22 }
  0x58   : > { %932 = vrot.lane.b32.xlu1 %v2380_v58, %s2193_s26 }
  0x5b   : > { %926 = vrot.lane.b32.xlu0 %v2387_v61, %s2193_s26  ;;  %786 = vrot.lane.b32.xlu2 %v2392_v32, %s2192_s25 }
  0x60   : > { %739 = vrot.lane.b32.xlu1 %v2363_v42, %s2187_s20 }
  0x63   : > { %702 = vrot.lane.b32.xlu0 %v2401_v7, %s2190_s23  ;;  %615 = vrot.lane.b32.xlu2 %v2330_v17, %s2189_s22 }
  0x68   : > { %858 = vrot.lane.b32.xlu1 %v2404_v9, %s2191_s24 }
  0x6b   : > { %821 = vrot.lane.b32.xlu0 %v2415_v15, %s2188_s21  ;;  %696 = vrot.lane.b32.xlu2 %v2345_v29, %s2190_s23  ;;  %v2422_v24 = vpop.permute.xlu2 %723 }
  0x70   : > { %690 = vrot.lane.b32.xlu1 %v2306_v1, %s2190_s23  ;;  %v2440_v1 = vsel %vm637_vm0, %v668_v26, %v669_v27  ;;  %v2501_v26 = vld [vmem:[%s2240_s19 + $0x9c] sm:$0xff]  ;;  %v393_v27 = vunpack.c.l.b16 %v271_v16  ;;  %v2551_v16 = vpack.c.b16 %v391_v4, %v391_v4 }
  0x71   : > { %v572_v28 = vshll.u32 %v2501_v26, 16  ;;  %v677_v21 = vrot.slane %v2501_v26, 1 }
  0x72   : > { %v553_v39 = vshll.u32 %v2551_v16, 16 }
  0x73   : > { %905 = vrot.lane.b32.xlu0 %v2427_v25, %s2194_s27  ;;  %733 = vrot.lane.b32.xlu2 %v2333_v18, %s2187_s20  ;;  %v574_v44 = vrot.slane %v572_v28, 1 }
  0x75   : > { %v2442_v31 = vpop.permute.xlu2 %686 }
  0x78   : > { %727 = vrot.lane.b32.xlu1 %v2264_v22, %s2187_s20  ;;  %v2021_v22 = vld [vmem:[%s3191_s1 + $0x8] sm:$0xff] }
  0x79   : > { %1283 = vmatpush.bf16.msra.mxu0 %v2021_v22  ;;  %2120 = vmatpush.bf16.msra.mxu1 %v2021_v22 }
  0x7a   : > { %2121 = vmatpush.bf16.msra.mxu2 %v2021_v22  ;;  %2122 = vmatpush.bf16.msra.mxu3 %v2021_v22  ;;  %v409_v22 = vpack.c.b16 %v393_v27, %v393_v27 }
  0x7b   : > { %940 = vrot.lane.b32.xlu0 %v2440_v1, %s2193_s26  ;;  %809 = vrot.lane.b32.xlu2 %v2387_v61, %s2188_s21 }
  0x7c   : > { %v678_v27 = vrot.slane %v409_v22, 1 }
  0x7d   : > { %v2457_v40 = vpop.permute.xlu2 %842  ;;  %1284 = vmatpush.bf16.msra.mxu0 %v2020_v45  ;;  %2123 = vmatpush.bf16.msra.mxu1 %v2020_v45 }
  0x7e   : > { %2124 = vmatpush.bf16.msra.mxu2 %v2020_v45  ;;  %2125 = vmatpush.bf16.msra.mxu3 %v2020_v45  ;;  %v577_v45 = vshll.u32 %v409_v22, 16  ;;  %v2573_v22 = vld [vmem:[%s2240_s19 + $0xa8] sm:$0xff] }
  0x7f   : > { %v582_v4 = vshrl.u32 %v2573_v22, 16 }
  0x80   : > { %780 = vrot.lane.b32.xlu1 %v2359_v38, %s2192_s25 }
  0x83   : > { %774 = vrot.lane.b32.xlu0 %v2293_v57, %s2192_s25  ;;  %852 = vrot.lane.b32.xlu2 %v2448_v37, %s2191_s24  ;;  %v560_v57 = vshll.u32 %v2468_v50, 16 }
  0x85   : > { %v2475_v53 = vpop.permute.xlu2 %613  ;;  %v562_v62 = vrot.slane %v560_v57, 1  ;;  %v579_v57 = vrot.slane %v577_v45, 1 }
  0x87   : > { %v563_v10 = vor.u32 %v562_v62, %v558_v60  ;;  %v2543_v62 = vld [vmem:[%s2240_s19 + $0x84] sm:$0xff] }
  0x88   : > { %846 = vrot.lane.b32.xlu1 %v2284_v47, %s2191_s24  ;;  %v548_v20 = vshll.u32 %v2543_v62, 16 }
  0x89   : > { %v2495_v19 = vsel %vm412_vm1, %v563_v10, %v567_v11 }
  0x8a   : > { %v806_v59 = vpop.permute.xlu1 %805  ;;  %v550_v36 = vrot.slane %v548_v20, 1 }
  0x8b   : > { %815 = vrot.lane.b32.xlu0 %v2380_v58, %s2188_s21  ;;  %928 = vrot.lane.b32.xlu2 %v2320_v13, %s2193_s26 }
  0x8d   : > { %v606_v6 = vpop.permute.xlu0 %605  ;;  %v2487_v12 = vpop.permute.xlu2 %725 }
  0x8e   : > { %v958_v33 = vsel %vm956_vm3, %v2247_v2, %v606_v6  ;;  %v570_v2 = vshrl.u32 %v2501_v26, 16 }
  0x8f   : > { %v991_v43 = vsel %vm989_vm4, %v958_v33, %v2442_v31  ;;  %v546_v33 = vshrl.u32 %v2543_v62, 16 }
  0x90   : > { %899 = vrot.lane.b32.xlu1 %v2481_v8, %s2194_s27  ;;  %v1024_v49 = vsel %vm1022_vm5, %v991_v43, %v2422_v24  ;;  %v575_v52 = vor.u32 %v574_v44, %v570_v2  ;;  %v2565_v2 = vsel %vm637_vm0, %v677_v21, %v678_v27  ;;  %v274_v44 = vld [vmem:[%s2240_s19 + $0xb0] sm:$0x1] }
  0x91   : > { %v551_v45 = vor.u32 %v550_v36, %v546_v33  ;;  %v966_v33 = vsel %vm956_vm3, %v2284_v47, %v2475_v53  ;;  %v671_v53 = vrot.slane %v2543_v62, 1 }
  0x92   : > { %v2489_v14 = vpop.permute.xlu1 %609  ;;  %v2540_v24 = vsel %vm412_vm1, %v575_v52, %v579_v57 }
  0x93   : > { %893 = vrot.lane.b32.xlu0 %v2303_v63, %s2194_s27  ;;  %629 = vrot.lane.b32.xlu2 %v2495_v19, %s2189_s22 }
  0x95   : > { %v2498_v23 = vpop.permute.xlu0 %607  ;;  %v2513_v35 = vpop.permute.xlu2 %778 }
  0x98   : > { %623 = vrot.lane.b32.xlu1 %v2392_v32, %s2189_s22 }
  0x9a   : > { %v2516_v41 = vpop.permute.xlu1 %611 }
  0x9b   : > { %934 = vrot.lane.b32.xlu0 %v2511_v34, %s2193_s26  ;;  %741 = vrot.lane.b32.xlu2 %v2404_v9, %s2187_s20 }
  0x9d   : > { %v771_v46 = vpop.permute.xlu0 %770  ;;  %v2533_v54 = vpop.permute.xlu2 %844 }
  0x9e   : > { %v1057_v31 = vsel %vm1055_vm6, %v1024_v49, %v771_v46  ;;  %v555_v46 = vrot.slane %v553_v39, 1  ;;  %v394_v49 = vunpack.c.l.b16 %v274_v44  ;;  %v680_v44 = vrot.slane %v2573_v22, 1 }
  0x9f   : > { %v1090_v56 = vsel %vm1088_vm7, %v1057_v31, %v806_v59 }
  0xa0   : > { %710 = vrot.lane.b32.xlu1 %v2524_v48, %s2190_s23  ;;  %v1123_v6 = vsel %vm1121_vm8, %v1090_v56, %v2457_v40  ;;  %v2580_v57 = vsel %vm412_vm1, %v551_v45, %v555_v46  ;;  %v410_v55 = vpack.c.b16 %v394_v49, %v394_v49  ;;  %v584_v56 = vshll.u32 %v2573_v22, 16 }
  0xa2   : > { %v925_v60 = vpop.permute.xlu1 %924  ;;  %v681_v45 = vrot.slane %v410_v55, 1 }
  0xa3   : > { %704 = vrot.lane.b32.xlu0 %v2415_v15, %s2190_s23  ;;  %794 = vrot.lane.b32.xlu2 %v2540_v24, %s2192_s25 }
  0xa5   : > { %v890_v10 = vpop.permute.xlu0 %889  ;;  %v2557_v40 = vpop.permute.xlu2 %897 }
  0xa6   : > { %v1156_v59 = vsel %vm1154_vm9, %v1123_v6, %v890_v10  ;;  %v586_v6 = vrot.slane %v584_v56, 1  ;;  %v589_v10 = vshll.u32 %v410_v55, 16  ;;  %v672_v56 = vrot.slane %v2551_v16, 1 }
  0xa7   : > { %v1189_v11 = vsel %vm1187_vm10, %v1156_v59, %v925_v60 }
  0xa8   : > { %1983 = vmatmul.msk.bf16.vlgmr.msra.gmra.mxu0 %vm1240_vm11, %v1189_v11  ;;  %788 = vrot.lane.b32.xlu1 %v2427_v25, %s2192_s25  ;;  %v587_v20 = vor.u32 %v586_v6, %v582_v4  ;;  %v591_v21 = vrot.slane %v589_v10, 1 }
  0xaa   : > { %v695_v28 = vpop.permute.xlu1 %694 }
  0xab   : > { %747 = vrot.lane.b32.xlu0 %v2501_v26, %s2187_s20  ;;  %860 = vrot.lane.b32.xlu2 %v2543_v62, %s2191_s24  ;;  %v999_v39 = vsel %vm989_vm4, %v966_v33, %v695_v28 }
  0xad   : > { %v689_v43 = vpop.permute.xlu0 %688  ;;  %v2575_v31 = vpop.permute.xlu2 %621 }
  0xb0   : > { %829 = vrot.lane.b32.xlu1 %v2565_v2, %s2188_s21 }
  0xb2   : > { %v773_v52 = vpop.permute.xlu1 %772 }
  0xb3   : > { %823 = vrot.lane.b32.xlu0 %v2440_v1, %s2188_s21  ;;  %907 = vrot.lane.b32.xlu2 %v2580_v57, %s2194_s27 }
  0xb5   : > { %v732_v60 = vpop.permute.xlu0 %731  ;;  %v2588_v59 = vpop.permute.xlu2 %786 }
  0xb6   : > { %v1032_v46 = vsel %vm1022_vm5, %v999_v39, %v732_v60  ;;  %v2618_v60 = vsel %vm637_vm0, %v680_v44, %v681_v45 }
  0xb7   : > { %v1065_v28 = vsel %vm1055_vm6, %v1032_v46, %v2513_v35  ;;  %v2630_v35 = vsel %vm637_vm0, %v671_v53, %v672_v56 }
  0xb8   : > { %617 = vrot.lane.b32.xlu1 %v2359_v38, %s2189_s22  ;;  %v2600_v38 = vsel %vm412_vm1, %v587_v20, %v591_v21 }
  0xba   : > { %v814_v11 = vpop.permute.xlu1 %813 }
  0xbb   : > { %866 = vrot.lane.b32.xlu0 %v2573_v22, %s2191_s24  ;;  %698 = vrot.lane.b32.xlu2 %v2380_v58, %s2190_s23  ;;  %v960_v58 = vsel %vm956_vm3, %v2243_v0, %v2498_v23  ;;  %v1098_v4 = vsel %vm1088_vm7, %v1065_v28, %v814_v11 }
  0xbd   : > { %v808_v27 = vpop.permute.xlu0 %807  ;;  %v2602_v36 = vpop.permute.xlu2 %615 }
  0xc0   : > { %692 = vrot.lane.b32.xlu1 %v2387_v61, %s2190_s23  ;;  %v993_v61 = vsel %vm989_vm4, %v960_v58, %v689_v43 }
  0xc1   : > { %v1026_v0 = vsel %vm1022_vm5, %v993_v61, %v2487_v12 }
  0xc2   : > { %v892_v49 = vpop.permute.xlu1 %891  ;;  %v1059_v43 = vsel %vm1055_vm6, %v1026_v0, %v773_v52 }
  0xc3   : > { %913 = vrot.lane.b32.xlu0 %v2600_v38, %s2194_s27  ;;  %729 = vrot.lane.b32.xlu2 %v2284_v47, %s2187_s20  ;;  %v1092_v6 = vsel %vm1088_vm7, %v1059_v43, %v808_v27  ;;  %v277_v43 = vld [vmem:[%s2240_s19 + $0xbc] sm:$0x1] }
  0xc4   : > { %v1125_v52 = vsel %vm1121_vm8, %v1092_v6, %v2533_v54  ;;  %v2704_v6 = vld [vmem:[%s2240_s19 + $0xb4] sm:$0xff] }
  0xc5   : > { %v851_v55 = vpop.permute.xlu0 %850  ;;  %v2632_v16 = vpop.permute.xlu2 %696  ;;  %v1158_v11 = vsel %vm1154_vm9, %v1125_v52, %v892_v49 }
  0xc6   : > { %v1131_v23 = vsel %vm1121_vm8, %v1098_v4, %v851_v55 }
  0xc7   : > { %v1164_v47 = vsel %vm1154_vm9, %v1131_v23, %v2557_v40 }
  0xc8   : > { %948 = vrot.lane.b32.xlu1 %v2618_v60, %s2193_s26 }
  0xca   : > { %v933_v10 = vpop.permute.xlu1 %932 }
  0xcb   : > { %942 = vrot.lane.b32.xlu0 %v2630_v35, %s2193_s26  ;;  %v1197_v12 = vsel %vm1187_vm10, %v1164_v47, %v933_v10  ;;  %782 = vrot.lane.b32.xlu2 %v2481_v8, %s2192_s25  ;;  %v395_v10 = vunpack.c.l.b16 %v277_v43  ;;  %v962_v47 = vsel %vm956_vm3, %v2251_v5, %v2489_v14  ;;  %v596_v5 = vshll.u32 %v2704_v6, 16 }
  0xcc   : > { %1987 = vmatmul.msk.bf16.vlgmr.msra.gmra.mxu1 %vm1240_vm11, %v1197_v12 }
  0xcd   : > { %v927_v20 = vpop.permute.xlu0 %926  ;;  %v2650_v40 = vpop.permute.xlu2 %733 }
  0xce   : > { %v1191_v21 = vsel %vm1187_vm10, %v1158_v11, %v927_v20  ;;  %v968_v20 = vsel %vm956_vm3, %v2309_v3, %v2602_v36 }
  0xcf   : > { %1984 = vmatmul.msk.bf16.gmra.mxu0 %vm1240_vm11, %v1191_v21 }
  0xd0   : > { %776 = vrot.lane.b32.xlu1 %v2303_v63, %s2192_s25  ;;  %v974_v63 = vsel %vm956_vm3, %v2348_v30, %v2575_v31 }
  0xd2   : > { %v740_v27 = vpop.permute.xlu1 %739 }
  0xd3   : > { %735 = vrot.lane.b32.xlu0 %v2448_v37, %s2187_s20  ;;  %848 = vrot.lane.b32.xlu2 %v2309_v3, %s2191_s24  ;;  %v598_v3 = vrot.slane %v596_v5, 1 }
  0xd5   : > { %v703_v54 = vpop.permute.xlu0 %702  ;;  %v810_v33 = vpop.permute.xlu2 %809 }
  0xd6   : > { %v1007_v46 = vsel %vm989_vm4, %v974_v63, %v703_v54  ;;  %v1001_v54 = vsel %vm989_vm4, %v968_v20, %v2632_v16 }
  0xd8   : > { %817 = vrot.lane.b32.xlu1 %v2511_v34, %s2188_s21 }
  0xda   : > { %v859_v39 = vpop.permute.xlu1 %858 }
  0xdb   : > { %811 = vrot.lane.b32.xlu0 %v2320_v13, %s2188_s21  ;;  %901 = vrot.lane.b32.xlu2 %v2374_v51, %s2194_s27  ;;  %v1040_v13 = vsel %vm1022_vm5, %v1007_v46, %v740_v27  ;;  %v411_v27 = vpack.c.b16 %v395_v10, %v395_v10  ;;  %v594_v46 = vshrl.u32 %v2704_v6, 16 }
  0xdc   : > { %v1073_v31 = vsel %vm1055_vm6, %v1040_v13, %v2588_v59  ;;  %v1034_v13 = vsel %vm1022_vm5, %v1001_v54, %v2650_v40 }
  0xdd   : > { %v822_v44 = vpop.permute.xlu0 %821  ;;  %v2667_v45 = vpop.permute.xlu2 %852  ;;  %v601_v36 = vshll.u32 %v411_v27, 16 }
  0xde   : > { %v1106_v61 = vsel %vm1088_vm7, %v1073_v31, %v822_v44 }
  0xdf   : > { %v1139_v56 = vsel %vm1121_vm8, %v1106_v61, %v859_v39  ;;  %v599_v61 = vor.u32 %v598_v3, %v594_v46 }
  0xe0   : > { %895 = vrot.lane.b32.xlu1 %v2330_v17, %s2194_s27 }
  0xe2   : > { %v691_v49 = vpop.permute.xlu1 %690 }
  0xe3   : > { %854 = vrot.lane.b32.xlu0 %v2348_v30, %s2191_s24  ;;  %625 = vrot.lane.b32.xlu2 %v2427_v25, %s2189_s22  ;;  %v995_v12 = vsel %vm989_vm4, %v962_v47, %v691_v49 }
  0xe5   : > { %v906_v58 = vpop.permute.xlu0 %905  ;;  %v929_v17 = vpop.permute.xlu2 %928 }
  0xe6   : > { %v1172_v28 = vsel %vm1154_vm9, %v1139_v56, %v906_v58 }
  0xe8   : > { %936 = vrot.lane.b32.xlu1 %v2401_v7, %s2193_s26 }
  0xea   : > { %v728_v53 = vpop.permute.xlu1 %727 }
  0xeb   : > { %930 = vrot.lane.b32.xlu0 %v2345_v29, %s2193_s26  ;;  %712 = vrot.lane.b32.xlu2 %v2565_v2, %s2190_s23  ;;  %v1028_v52 = vsel %vm1022_vm5, %v995_v12, %v728_v53  ;;  %v603_v53 = vrot.slane %v601_v36, 1 }
  0xed   : > { %v941_v55 = vpop.permute.xlu0 %940  ;;  %v2690_v59 = vpop.permute.xlu2 %629 }
  0xee   : > { %v1205_v25 = vsel %vm1187_vm10, %v1172_v28, %v941_v55  ;;  %v2748_v28 = vsel %vm412_vm1, %v599_v61, %v603_v53 }
  0xef   : > { %1991 = vmatmul.msk.bf16.vlgmr.msra.gmra.mxu2 %vm1240_vm11, %v1205_v25 }
  0xf0   : > { %706 = vrot.lane.b32.xlu1 %v2440_v1, %s2190_s23 }
  0xf2   : > { %v781_v29 = vpop.permute.xlu1 %780 }
  0xf3   : > { %631 = vrot.lane.b32.xlu0 %v2540_v24, %s2189_s22  ;;  %790 = vrot.lane.b32.xlu2 %v2580_v57, %s2192_s25  ;;  %v1067_v16 = vsel %vm1055_vm6, %v1034_v13, %v781_v29  ;;  %v683_v29 = vrot.slane %v2704_v6, 1  ;;  %v280_v13 = vld [vmem:[%s2240_s19 + $0xc8] sm:$0x1] }
  0xf5   : > { %v775_v4 = vpop.permute.xlu0 %774  ;;  %v2698_v0 = vpop.permute.xlu2 %741 }
  0xf6   : > { %v1061_v21 = vsel %vm1055_vm6, %v1028_v52, %v775_v4 }
  0xf7   : > { %v1094_v39 = vsel %vm1088_vm7, %v1061_v21, %v810_v33 }
  0xf8   : > { %749 = vrot.lane.b32.xlu1 %v2573_v22, %s2187_s20 }
  0xfa   : > { %v847_v23 = vpop.permute.xlu1 %846 }
  0xfb   : > { %743 = vrot.lane.b32.xlu0 %v2543_v62, %s2187_s20  ;;  %831 = vrot.lane.b32.xlu2 %v2618_v60, %s2188_s21  ;;  %v1127_v44 = vsel %vm1121_vm8, %v1094_v39, %v847_v23 }
  0xfd   : > { %v816_v1 = vpop.permute.xlu0 %815  ;;  %v2715_v11 = vpop.permute.xlu2 %794 }
  0xfe   : > { %v1100_v31 = vsel %vm1088_vm7, %v1067_v16, %v816_v1  ;;  %v756_v16 = vunpack.c.l.b16 %v280_v13 }
 0x100   : > { %825 = vrot.lane.b32.xlu1 %v2630_v35, %s2188_s21 }
 0x102   : > { %v900_v14 = vpop.permute.xlu1 %899 }
 0x103   : > { %796 = vrot.lane.b32.xlu0 %v2600_v38, %s2192_s25  ;;  %619 = vrot.lane.b32.xlu2 %v2481_v8, %s2189_s22  ;;  %v1133_v8 = vsel %vm1121_vm8, %v1100_v31, %v2667_v45  ;;  %v684_v45 = vrot.slane %v411_v27, 1  ;;  %v757_v31 = vpack.c.b16 %v756_v16, %v756_v16 }
 0x104   : > { %v1166_v40 = vsel %vm1154_vm9, %v1133_v8, %v900_v14 }
 0x105   : > { %v894_v63 = vpop.permute.xlu0 %893  ;;  %v2739_v33 = vpop.permute.xlu2 %860  ;;  %v2760_v43 = vsel %vm637_vm0, %v683_v29, %v684_v45 }
 0x106   : > { %v1160_v49 = vsel %vm1154_vm9, %v1127_v44, %v894_v63 }
 0x107   : > { %v1193_v58 = vsel %vm1187_vm10, %v1160_v49, %v929_v17 }
 0x108   : > { %1985 = vmatmul.msk.bf16.gmra.mxu0 %vm1240_vm11, %v1193_v58  ;;  %868 = vrot.lane.b32.xlu1 %v2704_v6, %s2191_s24 }
 0x10a   : > { %v624_v56 = vpop.permute.xlu1 %623 }
 0x10b   : > { %862 = vrot.lane.b32.xlu0 %v2468_v50, %s2191_s24  ;;  %700 = vrot.lane.b32.xlu2 %v2511_v34, %s2190_s23  ;;  %v976_v27 = vsel %vm956_vm3, %v2363_v42, %v624_v56 }
 0x10d   : > { %v935_v17 = vpop.permute.xlu0 %934  ;;  %v908_v25 = vpop.permute.xlu2 %907 }
 0x10e   : > { %v1199_v55 = vsel %vm1187_vm10, %v1166_v40, %v935_v17  ;;  %v766_v17 = vshll.u32 %v757_v31, 16 }
 0x10f   : > { %1988 = vmatmul.msk.bf16.gmra.mxu1 %vm1240_vm11, %v1199_v55 }
 0x110   : > { %915 = vrot.lane.b32.xlu1 %v2748_v28, %s2194_s27 }
 0x112   : > { %v711_v4 = vpop.permute.xlu1 %710 }
 0x113   : > { %909 = vrot.lane.b32.xlu0 %v2495_v19, %s2194_s27  ;;  %737 = vrot.lane.b32.xlu2 %v2348_v30, %s2187_s20 }
 0x115   : > { %v705_v23 = vpop.permute.xlu0 %704  ;;  %v2766_v34 = vpop.permute.xlu2 %698 }
 0x116   : > { %v1009_v5 = vsel %vm989_vm4, %v976_v27, %v705_v23  ;;  %v768_v23 = vrot.slane %v766_v17, 1  ;;  %v2162_v27 = vld [vmem:[%s2240_s19 + $0x24] sm:$0xff] }
 0x118   : > { %950 = vrot.lane.b32.xlu1 %v2760_v43, %s2193_s26 }
 0x11a   : > { %v789_v1 = vpop.permute.xlu1 %788 }
 0x11b   : > { %944 = vrot.lane.b32.xlu0 %v2524_v48, %s2193_s26  ;;  %856 = vrot.lane.b32.xlu2 %v2363_v42, %s2191_s24 }
 0x11d   : > { %v748_v10 = vpop.permute.xlu0 %747  ;;  %v2774_v47 = vpop.permute.xlu2 %729 }
 0x120   : > { %819 = vrot.lane.b32.xlu1 %v2401_v7, %s2188_s21 }
 0x122   : > { %v830_v30 = vpop.permute.xlu1 %829 }
 0x123   : > { %784 = vrot.lane.b32.xlu0 %v2374_v51, %s2192_s25  ;;  %627 = vrot.lane.b32.xlu2 %v2580_v57, %s2189_s22  ;;  %v982_v57 = vsel %vm956_vm3, %v2468_v50, %v2690_v59  ;;  %v1042_v59 = vsel %vm1022_vm5, %v1009_v5, %v2698_v0  ;;  %v964_v5 = vsel %vm956_vm3, %v2162_v27, %v2516_v41 }
 0x124   : > { %v1015_v54 = vsel %vm989_vm4, %v982_v57, %v711_v4  ;;  %v1075_v39 = vsel %vm1055_vm6, %v1042_v59, %v789_v1 }
 0x125   : > { %v2778_v12 = vpop.f32.mrf.mxu0  ;;  %v824_v52 = vpop.permute.xlu0 %823 }
 0x126   : > { %v2784_v20 = vpop.permute.xlu2 %782  ;;  %v1108_v44 = vsel %vm1088_vm7, %v1075_v39, %v824_v52 }
 0x127   : > { %v1141_v0 = vsel %vm1121_vm8, %v1108_v44, %v2739_v33  ;;  %v2018_v33 = vld [vmem:[%s2240_s19 + $0xc0] sm:$0xff]  ;;  %v2019_v44 = vld [vmem:[%s2240_s19 + $0xcc] sm:$0xff] }
 0x128   : > { %938 = vrot.lane.b32.xlu1 %v2415_v15, %s2193_s26  ;;  %v1174_v49 = vsel %vm1154_vm9, %v1141_v0, %v908_v25  ;;  %v761_v61 = vshll.u32 %v2018_v33, 16  ;;  %v759_v8 = vshrl.u32 %v2018_v33, 16  ;;  %v802_v55 = vrot.slane %v2018_v33, 1 }
 0x129   : > { %v803_v25 = vrot.slane %v757_v31, 1  ;;  %v921_v16 = vrot.slane %v2019_v44, 1 }
 0x12a   : > { %v2786_v21 = vpop.permute.xlu1 %617  ;;  %v763_v40 = vrot.slane %v761_v61, 1 }
 0x12b   : > { %903 = vrot.lane.b32.xlu0 %v2392_v32, %s2194_s27  ;;  %714 = vrot.lane.b32.xlu2 %v2618_v60, %s2190_s23  ;;  %v1048_v60 = vsel %vm1022_vm5, %v1015_v54, %v748_v10  ;;  %v970_v10 = vsel %vm956_vm3, %v2333_v18, %v2786_v21 }
 0x12c   : > { %v1081_v42 = vsel %vm1055_vm6, %v1048_v60, %v2715_v11  ;;  %v764_v4 = vor.u32 %v763_v40, %v759_v8 }
 0x12d   : > { %v2796_v51 = vpop.f32.mrf.mxu0  ;;  %v867_v7 = vpop.permute.xlu0 %866  ;;  %v1114_v63 = vsel %vm1088_vm7, %v1081_v42, %v830_v30 }
 0x12e   : > { %v2025_v15 = vpack.c.bf16 %v2796_v51, %v2778_v12  ;;  %v2808_v32 = vpop.permute.xlu2 %848  ;;  %v769_v52 = vsel %vm412_vm1, %v764_v4, %v768_v23 }
 0x130   : > { %2026 = vst [vmem:[%s2794_s10] sm:$0xff] %v2025_v15   ;;  %708 = vrot.lane.b32.xlu1 %v2630_v35, %s2190_s23 }
 0x132   : > { %v2813_v14 = vpop.permute.xlu1 %692 }
 0x133   : > { %633 = vrot.lane.b32.xlu0 %v2600_v38, %s2189_s22  ;;  %792 = vrot.lane.b32.xlu2 %v2495_v19, %s2192_s25  ;;  %v1147_v38 = vsel %vm1121_vm8, %v1114_v63, %v867_v7  ;;  %v1003_v7 = vsel %vm989_vm4, %v970_v10, %v2766_v34 }
 0x135   : > { %v914_v35 = vpop.permute.xlu0 %913 }
 0x136   : > { %v1180_v46 = vsel %vm1154_vm9, %v1147_v38, %v914_v35  ;;  %v2834_v19 = vpop.permute.xlu2 %901  ;;  %v283_v35 = vld [vmem:[%s2240_s19 + $0xd4] sm:$0x1] }
 0x137   : > { %v875_v63 = vunpack.c.l.b16 %v283_v35 }
 0x138   : > { %751 = vrot.lane.b32.xlu1 %v2704_v6, %s2187_s20 }
 0x13a   : > { %v949_v3 = vpop.permute.xlu1 %948 }
 0x13b   : > { %745 = vrot.lane.b32.xlu0 %v2468_v50, %s2187_s20  ;;  %v1213_v11 = vsel %vm1187_vm10, %v1180_v46, %v949_v3  ;;  %833 = vrot.lane.b32.xlu2 %v2760_v43, %s2188_s21 }
 0x13c   : > { %1995 = vmatmul.msk.bf16.vlgmr.msra.gmra.mxu3 %vm1240_vm11, %v1213_v11  ;;  %v880_v11 = vshll.u32 %v2019_v44, 16 }
 0x13d   : > { %v943_v36 = vpop.permute.xlu0 %942 }
 0x13e   : > { %v1207_v58 = vsel %vm1187_vm10, %v1174_v49, %v943_v36  ;;  %v2851_v53 = vpop.permute.xlu2 %625 }
 0x13f   : > { %1992 = vmatmul.msk.bf16.gmra.mxu2 %vm1240_vm11, %v1207_v58  ;;  %v978_v27 = vsel %vm956_vm3, %v2404_v9, %v2851_v53 }
 0x140   : > { %827 = vrot.lane.b32.xlu1 %v2524_v48, %s2188_s21 }
 0x142   : > { %v777_v50 = vpop.permute.xlu1 %776 }
 0x143   : > { %798 = vrot.lane.b32.xlu0 %v2748_v28, %s2192_s25  ;;  %911 = vrot.lane.b32.xlu2 %v2540_v24, %s2194_s27  ;;  %v804_v24 = vsel %vm637_vm0, %v802_v55, %v803_v25 }
 0x145   : > { %v736_v56 = vpop.permute.xlu0 %735 }
 0x146   : > { %v2866_v30 = vpop.permute.xlu2 %712  ;;  %v1036_v57 = vsel %vm1022_vm5, %v1003_v7, %v736_v56 }
 0x147   : > { %v1069_v54 = vsel %vm1055_vm6, %v1036_v57, %v2784_v20 }
 0x148   : > { %870 = vrot.lane.b32.xlu1 %v2018_v33, %s2191_s24 }
 0x149   : > { %v2856_v48 = vpop.f32.mrf.mxu1 }
 0x14a   : > { %v818_v29 = vpop.permute.xlu1 %817 }
 0x14b   : > { %864 = vrot.lane.b32.xlu0 %v2501_v26, %s2191_s24  ;;  %952 = vrot.lane.b32.xlu2 %v804_v24, %s2193_s26  ;;  %v1102_v39 = vsel %vm1088_vm7, %v1069_v54, %v818_v29 }
 0x14c   : > { %v2860_v45 = vpop.f32.mrf.mxu0 }
 0x14d   : > { %v812_v1 = vpop.permute.xlu0 %811 }
 0x14e   : > { %v791_v20 = vpop.permute.xlu2 %790 }
 0x150   : > { %946 = vrot.lane.b32.xlu1 %v2565_v2, %s2193_s26  ;;  %v997_v2 = vsel %vm989_vm4, %v964_v5, %v2813_v14 }
 0x151   : > { %v2874_v15 = vpop.f32.mrf.mxu1  ;;  %v1030_v41 = vsel %vm1022_vm5, %v997_v2, %v2774_v47 }
 0x152   : > { %v2045_v18 = vpack.c.bf16 %v2874_v15, %v2856_v48  ;;  %v896_v21 = vpop.permute.xlu1 %895  ;;  %v1063_v42 = vsel %vm1055_vm6, %v1030_v41, %v777_v50 }
 0x153   : > { %917 = vrot.lane.b32.xlu0 %v769_v52, %s2194_s27  ;;  %753 = vrot.lane.b32.xlu2 %v2018_v33, %s2187_s20  ;;  %v1096_v38 = vsel %vm1088_vm7, %v1063_v42, %v812_v1 }
 0x154   : > { %2105 = vst [vmem:[%s2794_s10 + $0x20] sm:$0xff] %v2045_v18   ;;  %v2886_v34 = vpop.f32.mrf.mxu0  ;;  %v1129_v3 = vsel %vm1121_vm8, %v1096_v38, %v2808_v32 }
 0x155   : > { %v2030_v60 = vpack.c.bf16 %v2886_v34, %v2860_v45  ;;  %v855_v59 = vpop.permute.xlu0 %854  ;;  %v1162_v36 = vsel %vm1154_vm9, %v1129_v3, %v896_v21 }
 0x156   : > { %v1135_v14 = vsel %vm1121_vm8, %v1102_v39, %v855_v59  ;;  %v832_v33 = vpop.permute.xlu2 %831 }
 0x157   : > { %2102 = vst [vmem:[%s2794_s10 + $0x8] sm:$0xff] %v2030_v60   ;;  %v1168_v46 = vsel %vm1154_vm9, %v1135_v14, %v2834_v19  ;;  %v882_v19 = vrot.slane %v880_v11, 1 }
 0x158   : > { %716 = vrot.lane.b32.xlu1 %v2760_v43, %s2190_s23  ;;  %v876_v43 = vpack.c.b16 %v875_v63, %v875_v63 }
 0x15a   : > { %v937_v0 = vpop.permute.xlu1 %936  ;;  %v885_v58 = vshll.u32 %v876_v43, 16  ;;  %v922_v32 = vrot.slane %v876_v43, 1 }
 0x15b   : > { %635 = vrot.lane.b32.xlu0 %v2748_v28, %s2189_s22  ;;  %v1201_v47 = vsel %vm1187_vm10, %v1168_v46, %v937_v0  ;;  %872 = vrot.lane.b32.xlu2 %v2019_v44, %s2191_s24  ;;  %v878_v28 = vshrl.u32 %v2019_v44, 16 }
 0x15c   : > { %1989 = vmatmul.msk.bf16.gmra.mxu1 %vm1240_vm11, %v1201_v47  ;;  %v887_v61 = vrot.slane %v885_v58, 1  ;;  %v923_v8 = vsel %vm637_vm0, %v921_v16, %v922_v32 }
 0x15d   : > { %v931_v49 = vpop.permute.xlu0 %930  ;;  %v883_v31 = vor.u32 %v882_v19, %v878_v28 }
 0x15e   : > { %v1195_v13 = vsel %vm1187_vm10, %v1162_v36, %v931_v49  ;;  %v620_v55 = vpop.permute.xlu2 %619 }
 0x15f   : > { %1986 = vmatmul.msk.bf16.gmra.mxu0 %vm1240_vm11, %v1195_v13  ;;  %v888_v40 = vsel %vm412_vm1, %v883_v31, %v887_v61  ;;  %v972_v43 = vsel %vm956_vm3, %v2448_v37, %v620_v55 }
 0x160   : > { %835 = vrot.lane.b32.xlu1 %v804_v24, %s2188_s21 }
 0x162   : > { %v707_v50 = vpop.permute.xlu1 %706 }
 0x163   : > { %800 = vrot.lane.b32.xlu0 %v769_v52, %s2192_s25  ;;  %v1011_v35 = vsel %vm989_vm4, %v978_v27, %v707_v50 }
 0x165   : > { %v632_v56 = vpop.permute.xlu0 %631 }
 0x166   : > { %v701_v1 = vpop.permute.xlu2 %700  ;;  %v984_v57 = vsel %vm956_vm3, %v2501_v26, %v632_v56 }
 0x167   : > { %v1017_v5 = vsel %vm989_vm4, %v984_v57, %v2866_v30  ;;  %v1005_v49 = vsel %vm989_vm4, %v972_v43, %v701_v1 }
 0x168   : > { %954 = vrot.lane.b32.xlu1 %v923_v8, %s2193_s26 }
 0x16a   : > { %v750_v17 = vpop.permute.xlu1 %749 }
 0x16b   : > { %919 = vrot.lane.b32.xlu0 %v888_v40, %s2194_s27  ;;  %v1050_v2 = vsel %vm1022_vm5, %v1017_v5, %v750_v17 }
 0x16d   : > { %v744_v25 = vpop.permute.xlu0 %743 }
 0x16e   : > { %v738_v18 = vpop.permute.xlu2 %737  ;;  %v1044_v26 = vsel %vm1022_vm5, %v1011_v35, %v744_v25 }
 0x16f   : > { %v1077_v9 = vsel %vm1055_vm6, %v1044_v26, %v791_v20  ;;  %v1038_v58 = vsel %vm1022_vm5, %v1005_v49, %v738_v18 }
 0x172   : > { %v2922_v29 = vpop.f32.mrf.mxu2  ;;  %v826_v4 = vpop.permute.xlu1 %825 }
 0x173   : > { %v1110_v42 = vsel %vm1088_vm7, %v1077_v9, %v826_v4 }
 0x175   : > { %v797_v23 = vpop.permute.xlu0 %796 }
 0x176   : > { %v1083_v54 = vsel %vm1055_vm6, %v1050_v2, %v797_v23  ;;  %v857_v41 = vpop.permute.xlu2 %856 }
 0x177   : > { %v1116_v39 = vsel %vm1088_vm7, %v1083_v54, %v832_v33 }
 0x17a   : > { %v2924_v24 = vpop.f32.mrf.mxu2  ;;  %v869_v10 = vpop.permute.xlu1 %868 }
 0x17b   : > { %v2065_v52 = vpack.c.bf16 %v2924_v24, %v2922_v29  ;;  %v1149_v14 = vsel %vm1121_vm8, %v1116_v39, %v869_v10 }
 0x17d   : > { %2109 = vst [vmem:[%s2794_s10 + $0x40] sm:$0xff] %v2065_v52   ;;  %v863_v7 = vpop.permute.xlu0 %862 }
 0x17e   : > { %v1143_v63 = vsel %vm1121_vm8, %v1110_v42, %v863_v7  ;;  %v628_v36 = vpop.permute.xlu2 %627 }
 0x17f   : > { %v980_v10 = vsel %vm956_vm3, %v2543_v62, %v628_v36 }
 0x182   : > { %v916_v21 = vpop.permute.xlu1 %915 }
 0x183   : > { %v1182_v53 = vsel %vm1154_vm9, %v1149_v14, %v916_v21 }
 0x185   : > { %v2938_v60 = vpop.f32.mrf.mxu0  ;;  %v910_v59 = vpop.permute.xlu0 %909 }
 0x186   : > { %v1176_v0 = vsel %vm1154_vm9, %v1143_v63, %v910_v59  ;;  %v715_v37 = vpop.permute.xlu2 %714 }
 0x18a   : > { %v951_v30 = vpop.permute.xlu1 %950 }
 0x18b   : > { %v1215_v44 = vsel %vm1187_vm10, %v1182_v53, %v951_v30 }
 0x18c   : > { %v2949_v38 = vpop.f32.mrf.mxu1  ;;  %1996 = vmatmul.msk.bf16.gmra.mxu3 %vm1240_vm11, %v1215_v44 }
 0x18d   : > { %v2953_v46 = vpop.f32.mrf.mxu0  ;;  %v945_v47 = vpop.permute.xlu0 %944 }
 0x18e   : > { %v2035_v20 = vpack.c.bf16 %v2953_v46, %v2938_v60  ;;  %v1209_v3 = vsel %vm1187_vm10, %v1176_v0, %v945_v47  ;;  %v793_v17 = vpop.permute.xlu2 %792 }
 0x18f   : > { %1993 = vmatmul.msk.bf16.gmra.mxu2 %vm1240_vm11, %v1209_v3 }
 0x190   : > { %2103 = vst [vmem:[%s2794_s10 + $0x10] sm:$0xff] %v2035_v20  }
 0x192   : > { %v820_v11 = vpop.permute.xlu1 %819 }
 0x194   : > { %v2963_v13 = vpop.f32.mrf.mxu1 }
 0x195   : > { %v2050_v28 = vpack.c.bf16 %v2963_v13, %v2949_v38  ;;  %v785_v19 = vpop.permute.xlu0 %784 }
 0x196   : > { %v1071_v16 = vsel %vm1055_vm6, %v1038_v58, %v785_v19  ;;  %v834_v4 = vpop.permute.xlu2 %833 }
 0x197   : > { %2106 = vst [vmem:[%s2794_s10 + $0x28] sm:$0xff] %v2050_v28   ;;  %v1104_v32 = vsel %vm1088_vm7, %v1071_v16, %v820_v11 }
 0x198   : > { %v1137_v33 = vsel %vm1121_vm8, %v1104_v32, %v857_v41 }
 0x19a   : > { %v939_v50 = vpop.permute.xlu1 %938 }
 0x19d   : > { %v904_v31 = vpop.permute.xlu0 %903 }
 0x19e   : > { %v1170_v61 = vsel %vm1154_vm9, %v1137_v33, %v904_v31  ;;  %v912_v18 = vpop.permute.xlu2 %911 }
 0x19f   : > { %v1203_v56 = vsel %vm1187_vm10, %v1170_v61, %v939_v50 }
 0x1a0   : > { %1990 = vmatmul.msk.bf16.gmra.mxu1 %vm1240_vm11, %v1203_v56 }
 0x1a2   : > { %v709_v8 = vpop.permute.xlu1 %708 }
 0x1a3   : > { %v1013_v52 = vsel %vm989_vm4, %v980_v10, %v709_v8 }
 0x1a5   : > { %v634_v40 = vpop.permute.xlu0 %633 }
 0x1a6   : > { %v986_v21 = vsel %vm956_vm3, %v2573_v22, %v634_v40  ;;  %v953_v53 = vpop.permute.xlu2 %952 }
 0x1a7   : > { %v1019_v54 = vsel %vm989_vm4, %v986_v21, %v715_v37 }
 0x1aa   : > { %v752_v55 = vpop.permute.xlu1 %751 }
 0x1ab   : > { %v1052_v62 = vsel %vm1022_vm5, %v1019_v54, %v752_v55 }
 0x1ad   : > { %v746_v25 = vpop.permute.xlu0 %745 }
 0x1ae   : > { %v1046_v7 = vsel %vm1022_vm5, %v1013_v52, %v746_v25  ;;  %v754_v49 = vpop.permute.xlu2 %753 }
 0x1af   : > { %v1079_v27 = vsel %vm1055_vm6, %v1046_v7, %v793_v17 }
 0x1b2   : > { %v828_v23 = vpop.permute.xlu1 %827 }
 0x1b3   : > { %v1112_v2 = vsel %vm1088_vm7, %v1079_v27, %v828_v23  ;;  %v1502_v23 = vadd.f32 %v2796_v51, %v2778_v12 }
 0x1b5   : > { %v799_v1 = vpop.permute.xlu0 %798 }
 0x1b6   : > { %v1085_v26 = vsel %vm1055_vm6, %v1052_v62, %v799_v1  ;;  %v873_v33 = vpop.permute.xlu2 %872  ;;  %v1503_v1 = vadd.f32 %v1502_v23, %v2860_v45  ;;  %v2195_v23 = vmov 256.0  }
 0x1b7   : > { %v1118_v9 = vsel %vm1088_vm7, %v1085_v26, %v834_v4  ;;  %2160 = vrcp.f32 %v2195_v23 }
 0x1b8   : > { %v1504_v52 = vadd.f32 %v1503_v1, %v2886_v34 }
 0x1ba   : > { %v871_v57 = vpop.permute.xlu1 %870  ;;  %v1505_v7 = vadd.f32 %v1504_v52, %v2938_v60 }
 0x1bb   : > { %v1151_v30 = vsel %vm1121_vm8, %v1118_v9, %v871_v57 }
 0x1bd   : > { %v865_v5 = vpop.permute.xlu0 %864  ;;  %v2161_v52 = vpop.eup %2160 }
 0x1be   : > { %v1145_v59 = vsel %vm1121_vm8, %v1112_v2, %v865_v5  ;;  %vm1546_vm12 = vweird.f32 %v2161_v52 }
 0x1bf   : > { %v2985_v35 = vpop.f32.mrf.mxu3  ;;  %v1178_v39 = vsel %vm1154_vm9, %v1145_v59, %v912_v18  ;;  %v1506_v18 = vadd.f32 %v1505_v7, %v2953_v46 }
 0x1c2   : > { %v2990_v41 = vpop.f32.mrf.mxu2  ;;  %v947_v22 = vpop.permute.xlu1 %946 }
 0x1c3   : > { %v1211_v14 = vsel %vm1187_vm10, %v1178_v39, %v947_v22 }
 0x1c4   : > { %1994 = vmatmul.msk.bf16.gmra.mxu2 %vm1240_vm11, %v1211_v14 }
 0x1c5   : > { %v918_v42 = vpop.permute.xlu0 %917 }
 0x1c6   : > { %v1184_v44 = vsel %vm1154_vm9, %v1151_v30, %v918_v42 }
 0x1c7   : > { %v2997_v63 = vpop.f32.mrf.mxu3  ;;  %v1217_v0 = vsel %vm1187_vm10, %v1184_v44, %v953_v53 }
 0x1c8   : > { %v2085_v47 = vpack.c.bf16 %v2997_v63, %v2985_v35  ;;  %1997 = vmatmul.msk.bf16.gmra.mxu3 %vm1240_vm11, %v1217_v0 }
 0x1ca   : > { %2113 = vst [vmem:[%s2794_s10 + $0x60] sm:$0xff] %v2085_v47   ;;  %v3004_v20 = vpop.f32.mrf.mxu2  ;;  %v717_v3 = vpop.permute.xlu1 %716 }
 0x1cb   : > { %v2070_v43 = vpack.c.bf16 %v3004_v20, %v2990_v41 }
 0x1cd   : > { %2110 = vst [vmem:[%s2794_s10 + $0x48] sm:$0xff] %v2070_v43   ;;  %v636_v11 = vpop.permute.xlu0 %635 }
 0x1ce   : > { %v988_v36 = vsel %vm956_vm3, %v2704_v6, %v636_v11 }
 0x1cf   : > { %v1021_v19 = vsel %vm989_vm4, %v988_v36, %v717_v3 }
 0x1d0   : > { %v1054_v16 = vsel %vm1022_vm5, %v1021_v19, %v754_v49 }
 0x1d2   : > { %v836_v28 = vpop.permute.xlu1 %835 }
 0x1d5   : > { %v801_v58 = vpop.permute.xlu0 %800 }
 0x1d6   : > { %v1087_v32 = vsel %vm1055_vm6, %v1054_v16, %v801_v58 }
 0x1d7   : > { %v1120_v37 = vsel %vm1088_vm7, %v1087_v32, %v836_v28 }
 0x1d8   : > { %v1153_v6 = vsel %vm1121_vm8, %v1120_v37, %v873_v33 }
 0x1d9   : > { %v3014_v50 = vpop.f32.mrf.mxu1 }
 0x1da   : > { %v955_v61 = vpop.permute.xlu1 %954 }
 0x1dc   : > { %v3017_v31 = vpop.f32.mrf.mxu0 }
 0x1dd   : > { %v920_v56 = vpop.permute.xlu0 %919  ;;  %v1507_v21 = vadd.f32 %v1506_v18, %v3017_v31 }
 0x1de   : > { %v1186_v8 = vsel %vm1154_vm9, %v1153_v6, %v920_v56 }
 0x1df   : > { %v1219_v40 = vsel %vm1187_vm10, %v1186_v8, %v955_v61 }
 0x1e0   : > { %1998 = vmatmul.msk.bf16.gmra.mxu3 %vm1240_vm11, %v1219_v40 }
 0x1e1   : > { %v3023_v17 = vpop.f32.mrf.mxu1 }
 0x1e2   : > { %v2055_v55 = vpack.c.bf16 %v3023_v17, %v3014_v50 }
 0x1e4   : > { %2107 = vst [vmem:[%s2794_s10 + $0x30] sm:$0xff] %v2055_v55   ;;  %v3028_v25 = vpop.f32.mrf.mxu0 }
 0x1e5   : > { %v2040_v4 = vpack.c.bf16 %v3028_v25, %v3017_v31  ;;  %v1508_v5 = vadd.f32 %v1507_v21, %v3028_v25 }
 0x1e7   : > { %2104 = vst [vmem:[%s2794_s10 + $0x18] sm:$0xff] %v2040_v4   ;;  %v1509_v62 = vadd.f32 %v1508_v5, %v2856_v48 }
 0x1e9   : > { %v1510_v39 = vadd.f32 %v1509_v62, %v2874_v15 }
 0x1eb   : > { %v1511_v22 = vadd.f32 %v1510_v39, %v2949_v38 }
 0x1ed   : > { %v1512_v53 = vadd.f32 %v1511_v22, %v2963_v13 }
 0x1ef   : > { %v1513_v30 = vadd.f32 %v1512_v53, %v3014_v50 }
 0x1f1   : > { %v1514_v42 = vadd.f32 %v1513_v30, %v3023_v17 }
 0x20f   : > { %v3036_v10 = vpop.f32.mrf.mxu3 }
 0x212   : > { %v3040_v57 = vpop.f32.mrf.mxu2 }
 0x217   : > { %v3044_v27 = vpop.f32.mrf.mxu3 }
 0x218   : > { %v2090_v2 = vpack.c.bf16 %v3044_v27, %v3036_v10 }
 0x21a   : > { %2114 = vst [vmem:[%s2794_s10 + $0x68] sm:$0xff] %v2090_v2   ;;  %v3050_v54 = vpop.f32.mrf.mxu2  ;;  %v1541_v2 = vmul.f32 256.0, %v2161_v52 }
 0x21b   : > { %v2075_v59 = vpack.c.bf16 %v3050_v54, %v3040_v57 }
 0x21c   : > { %v1542_v39 = vsub.f32 1.0, %v1541_v2 }
 0x21d   : > { %2111 = vst [vmem:[%s2794_s10 + $0x50] sm:$0xff] %v2075_v59   ;;  %v3056_v26 = vpop.f32.mrf.mxu1 }
 0x21e   : > { %v1515_v44 = vadd.f32 %v1514_v42, %v3056_v26  ;;  %v1543_v53 = vmul.f32 %v2161_v52, %v1542_v39 }
 0x220   : > { %v1544_v42 = vadd.f32 %v2161_v52, %v1543_v53 }
 0x225   : > { %v3060_v14 = vpop.f32.mrf.mxu1 }
 0x226   : > { %v2060_v9 = vpack.c.bf16 %v3060_v14, %v3056_v26  ;;  %v1516_v0 = vadd.f32 %v1515_v44, %v3060_v14 }
 0x228   : > { %2108 = vst [vmem:[%s2794_s10 + $0x38] sm:$0xff] %v2060_v9   ;;  %v1517_v47 = vadd.f32 %v1516_v0, %v2922_v29  ;;  %v1548_v0 = vsel %vm1546_vm12, %v2161_v52, %v1544_v42 }
 0x22a   : > { %v1518_v3 = vadd.f32 %v1517_v47, %v2924_v24 }
 0x22c   : > { %v1519_v43 = vadd.f32 %v1518_v3, %v2990_v41 }
 0x22e   : > { %v1520_v11 = vadd.f32 %v1519_v43, %v3004_v20 }
 0x230   : > { %v1521_v49 = vadd.f32 %v1520_v11, %v3040_v57 }
 0x232   : > { %v1522_v19 = vadd.f32 %v1521_v49, %v3050_v54 }
 0x247   : > { %v3074_v36 = vpop.f32.mrf.mxu2 }
 0x248   : > { %v1523_v58 = vadd.f32 %v1522_v19, %v3074_v36 }
 0x24b   : > { %v3077_v28 = vpop.f32.mrf.mxu3 }
 0x24f   : > { %v3081_v16 = vpop.f32.mrf.mxu2 }
 0x250   : > { %v2080_v32 = vpack.c.bf16 %v3081_v16, %v3074_v36  ;;  %v1524_v37 = vadd.f32 %v1523_v58, %v3081_v16 }
 0x252   : > { %2112 = vst [vmem:[%s2794_s10 + $0x58] sm:$0xff] %v2080_v32   ;;  %v1525_v61 = vadd.f32 %v1524_v37, %v2985_v35 }
 0x253   : > { %v3087_v33 = vpop.f32.mrf.mxu3 }
 0x254   : > { %v2095_v6 = vpack.c.bf16 %v3087_v33, %v3077_v28  ;;  %v1526_v56 = vadd.f32 %v1525_v61, %v2997_v63 }
 0x256   : > { %2115 = vst [vmem:[%s2794_s10 + $0x70] sm:$0xff] %v2095_v6   ;;  %v1527_v8 = vadd.f32 %v1526_v56, %v3036_v10 }
 0x258   : > { %v1528_v40 = vadd.f32 %v1527_v8, %v3044_v27 }
 0x25a   : > { %v1529_v4 = vadd.f32 %v1528_v40, %v3077_v28 }
 0x25c   : > { %v1530_v1 = vadd.f32 %v1529_v4, %v3087_v33 }
 0x263   : > { %v3096_v55 = vpop.f32.mrf.mxu3 }
 0x264   : > { %v1531_v7 = vadd.f32 %v1530_v1, %v3096_v55 }
 0x26b   : > { %v3101_v18 = vpop.f32.mrf.mxu3 }
 0x26c   : > { %v2100_v21 = vpack.c.bf16 %v3101_v18, %v3096_v55  ;;  %v1532_v5 = vadd.f32 %v1531_v7, %v3101_v18 }
 0x26e   : > { %2116 = vst [vmem:[%s2794_s10 + $0x78] sm:$0xff] %v2100_v21   ;;  %v1533_v59 = vrot.slane %v1532_v5, 4 }
 0x270   : > { %v1534_v62 = vadd.f32 %v1533_v59, %v1532_v5 }
 0x272   : > { %v1535_v22 = vrot.slane %v1534_v62, 2 }
 0x274   : > { %v1536_v9 = vadd.f32 %v1535_v22, %v1534_v62 }
 0x276   : > { %v1537_v30 = vrot.slane %v1536_v9, 1 }
 0x278   : > { %v3107_v44 = vadd.f32 %v1537_v30, %v1536_v9 }
 0x27a   : > { %v3110_v47 = vmul.f32 %v1548_v0, %v3107_v44 }
 0x27c   : > { %v1555_v3 = vsub.f32 %v2778_v12, %v3110_v47  ;;  %v1556_v43 = vsub.f32 %v2796_v51, %v3110_v47  ;;  %v1557_v11 = vsub.f32 %v2860_v45, %v3110_v47  ;;  %v1558_v58 = vsub.f32 %v2886_v34, %v3110_v47 }
 0x27d   : > { %v1559_v32 = vsub.f32 %v2938_v60, %v3110_v47  ;;  %v1560_v6 = vsub.f32 %v2953_v46, %v3110_v47  ;;  %v1561_v51 = vsub.f32 %v3017_v31, %v3110_v47  ;;  %v1562_v40 = vsub.f32 %v3028_v25, %v3110_v47 }
 0x27e   : > { %v1683_v49 = vmul.f32 %v1555_v3, %v1555_v3  ;;  %v1684_v19 = vmul.f32 %v1556_v43, %v1556_v43  ;;  %v1685_v37 = vmul.f32 %v1557_v11, %v1557_v11  ;;  %v1686_v12 = vmul.f32 %v1558_v58, %v1558_v58 }
 0x27f   : > { %v1687_v8 = vmul.f32 %v1559_v32, %v1559_v32  ;;  %v1688_v4 = vmul.f32 %v1560_v6, %v1560_v6  ;;  %v1563_v60 = vsub.f32 %v2856_v48, %v3110_v47  ;;  %v1689_v23 = vmul.f32 %v1561_v51, %v1561_v51 }
 0x280   : > { %v1715_v61 = vadd.f32 %v1684_v19, %v1683_v49  ;;  %v1564_v46 = vsub.f32 %v2874_v15, %v3110_v47  ;;  %v1690_v52 = vmul.f32 %v1562_v40, %v1562_v40  ;;  %v1565_v31 = vsub.f32 %v2949_v38, %v3110_v47 }
 0x281   : > { %v1691_v21 = vmul.f32 %v1563_v60, %v1563_v60  ;;  %v1566_v25 = vsub.f32 %v2963_v13, %v3110_v47  ;;  %v1567_v48 = vsub.f32 %v3014_v50, %v3110_v47  ;;  %v1568_v15 = vsub.f32 %v3023_v17, %v3110_v47 }
 0x282   : > { %v1716_v56 = vadd.f32 %v1715_v61, %v1685_v37  ;;  %v1692_v2 = vmul.f32 %v1564_v46, %v1564_v46  ;;  %v1693_v62 = vmul.f32 %v1565_v31, %v1565_v31  ;;  %v1569_v38 = vsub.f32 %v3056_v26, %v3110_v47 }
 0x283   : > { %v1694_v22 = vmul.f32 %v1566_v25, %v1566_v25  ;;  %v1695_v53 = vmul.f32 %v1567_v48, %v1567_v48  ;;  %v1570_v13 = vsub.f32 %v3060_v14, %v3110_v47  ;;  %v1696_v42 = vmul.f32 %v1568_v15, %v1568_v15 }
 0x284   : > { %v1717_v45 = vadd.f32 %v1716_v56, %v1686_v12  ;;  %v1571_v50 = vsub.f32 %v2922_v29, %v3110_v47  ;;  %v1697_v3 = vmul.f32 %v1569_v38, %v1569_v38  ;;  %v1572_v17 = vsub.f32 %v2924_v24, %v3110_v47 }
 0x285   : > { %v1698_v11 = vmul.f32 %v1570_v13, %v1570_v13  ;;  %v1573_v26 = vsub.f32 %v2990_v41, %v3110_v47  ;;  %v1574_v14 = vsub.f32 %v3004_v20, %v3110_v47  ;;  %v1575_v29 = vsub.f32 %v3040_v57, %v3110_v47 }
 0x286   : > { %v1718_v34 = vadd.f32 %v1717_v45, %v1687_v8  ;;  %v1699_v19 = vmul.f32 %v1571_v50, %v1571_v50  ;;  %v1700_v32 = vmul.f32 %v1572_v17, %v1572_v17  ;;  %v1576_v24 = vsub.f32 %v3050_v54, %v3110_v47 }
 0x287   : > { %v1701_v61 = vmul.f32 %v1573_v26, %v1573_v26  ;;  %v1702_v12 = vmul.f32 %v1574_v14, %v1574_v14  ;;  %v1577_v41 = vsub.f32 %v3074_v36, %v3110_v47  ;;  %v1703_v51 = vmul.f32 %v1575_v29, %v1575_v29 }
 0x288   : > { %v1719_v1 = vadd.f32 %v1718_v34, %v1688_v4  ;;  %v1578_v20 = vsub.f32 %v3081_v16, %v3110_v47  ;;  %v1704_v45 = vmul.f32 %v1576_v24, %v1576_v24  ;;  %v1579_v57 = vsub.f32 %v2985_v35, %v3110_v47 }
 0x289   : > { %v1705_v4 = vmul.f32 %v1577_v41, %v1577_v41  ;;  %v1580_v54 = vsub.f32 %v2997_v63, %v3110_v47  ;;  %v1581_v36 = vsub.f32 %v3036_v10, %v3110_v47  ;;  %v1582_v16 = vsub.f32 %v3044_v27, %v3110_v47 }
 0x28a   : > { %v1720_v7 = vadd.f32 %v1719_v1, %v1689_v23  ;;  %v1706_v60 = vmul.f32 %v1578_v20, %v1578_v20  ;;  %v1707_v1 = vmul.f32 %v1579_v57, %v1579_v57  ;;  %v1583_v35 = vsub.f32 %v3077_v28, %v3110_v47 }
 0x28b   : > { %v1709_v31 = vmul.f32 %v1581_v36, %v1581_v36  ;;  %v1584_v63 = vsub.f32 %v3087_v33, %v3110_v47  ;;  %v1585_v10 = vsub.f32 %v3096_v55, %v3110_v47  ;;  %v1586_v27 = vsub.f32 %v3101_v18, %v3110_v47 }
 0x28c   : > { %v1721_v5 = vadd.f32 %v1720_v7, %v1690_v52  ;;  %v1708_v52 = vmul.f32 %v1580_v54, %v1580_v54  ;;  %v1436_v33 = vlaneseq }
 0x28d   : > { %v1712_v48 = vmul.f32 %v1584_v63, %v1584_v63  ;;  %v1714_v15 = vmul.f32 %v1586_v27, %v1586_v27 }
 0x28e   : > { %v1722_v59 = vadd.f32 %v1721_v5, %v1691_v21  ;;  %v1710_v5 = vmul.f32 %v1582_v16, %v1582_v16  ;;  %v1437_v13 = vshrl.u32 %v1436_v33, 7 }
 0x290   : > { %v1723_v39 = vadd.f32 %v1722_v59, %v1692_v2  ;;  %v1711_v2 = vmul.f32 %v1583_v35, %v1583_v35  ;;  %vm1753_vm13 = vcmp.eq.s32.totalorder %v1437_v13, 1  ;;  %vm1752_vm14 = vcmp.eq.s32.totalorder %v1437_v13, 0 }
 0x292   : > { %v1724_v9 = vadd.f32 %v1723_v39, %v1693_v62  ;;  %v1713_v39 = vmul.f32 %v1585_v10, %v1585_v10 }
 0x294   : > { %v1725_v30 = vadd.f32 %v1724_v9, %v1694_v22 }
 0x296   : > { %v1726_v0 = vadd.f32 %v1725_v30, %v1695_v53 }
 0x298   : > { %v1727_v43 = vadd.f32 %v1726_v0, %v1696_v42 }
 0x29a   : > { %v1728_v49 = vadd.f32 %v1727_v43, %v1697_v3 }
 0x29c   : > { %v1729_v58 = vadd.f32 %v1728_v49, %v1698_v11 }
 0x29e   : > { %v1730_v37 = vadd.f32 %v1729_v58, %v1699_v19 }
 0x2a0   : > { %v1731_v6 = vadd.f32 %v1730_v37, %v1700_v32 }
 0x2a2   : > { %v1732_v56 = vadd.f32 %v1731_v6, %v1701_v61 }
 0x2a4   : > { %v1733_v8 = vadd.f32 %v1732_v56, %v1702_v12 }
 0x2a6   : > { %v1734_v40 = vadd.f32 %v1733_v8, %v1703_v51 }
 0x2a8   : > { %v1735_v34 = vadd.f32 %v1734_v40, %v1704_v45 }
 0x2aa   : > { %v1736_v23 = vadd.f32 %v1735_v34, %v1705_v4 }
 0x2ac   : > { %v1737_v46 = vadd.f32 %v1736_v23, %v1706_v60 }
 0x2ae   : > { %v1738_v7 = vadd.f32 %v1737_v46, %v1707_v1 }
 0x2b0   : > { %v1739_v21 = vadd.f32 %v1738_v7, %v1708_v52 }
 0x2b2   : > { %v1740_v25 = vadd.f32 %v1739_v21, %v1709_v31 }
 0x2b4   : > { %v1741_v59 = vadd.f32 %v1740_v25, %v1710_v5 }
 0x2b6   : > { %v1742_v62 = vadd.f32 %v1741_v59, %v1711_v2 }
 0x2b8   : > { %v1743_v28 = vadd.f32 %v1742_v62, %v1712_v48 }
 0x2ba   : > { %v1744_v22 = vadd.f32 %v1743_v28, %v1713_v39 }
 0x2bc   : > { %v1745_v9 = vadd.f32 %v1744_v22, %v1714_v15 }
 0x2be   : > { %v1746_v38 = vrot.slane %v1745_v9, 4 }
 0x2c0   : > { %v1747_v53 = vadd.f32 %v1746_v38, %v1745_v9 }
 0x2c2   : > { %v1748_v30 = vrot.slane %v1747_v53, 2 }
 0x2c4   : > { %v1749_v42 = vadd.f32 %v1748_v30, %v1747_v53 }
 0x2c6   : > { %v1750_v55 = vrot.slane %v1749_v42, 1 }
 0x2c8   : > { %v1751_v0 = vadd.f32 %v1750_v55, %v1749_v42 }
 0x2ca   : > { %v1754_v18 = vsel %vm1753_vm13, %v1751_v0, 0.0 }
 0x2cb   : > { %v1755_v47 = vsel %vm1752_vm14, %v3107_v44, %v1754_v18 }
 0x2cc   : > { %1756 = vst [vmem:[%s228_s18] sm:$0xff] %v1755_v47 }
 0x2cd PF: > { %s14_s14 = sadd.s32 1, %s2185_s14   ;;  %s3194_s12 = smov %s2181_s13 }
 0x2ce   : > { %p11_p5 = scmp.ge.s32.totalorder %s14_s14, 4   ;;  %s3195_s13 = smov %s3197_s15 }
 0x2d0   :  { %13 = sbr.rel (!%p11_p5) target bundleno = 2 (0x2), region = 70 }

</bundles_post_ra>
